<compile_context>
chip_gen: v6e
topology: v6e:2x2x1
jax: 0.10.0
libtpu: 0.0.40
codegen_flags: <defaults>
</compile_context>

<pallas_src>
import functools

import jax
import jax.numpy as jnp
from jax.experimental import pallas as pl
from jax.experimental.pallas import tpu as pltpu


# ---------------------------------------------------------------------------
# VMEM budget / tile selection helpers
# ---------------------------------------------------------------------------
@functools.lru_cache(maxsize=None)
def _vmem_limit_bytes():
    # Half of physical capacity, capped at 64 MiB: 64 MiB scoped on v5e/v6e
    # (128 MiB physical), 32 MiB on v7x (64 MiB physical).
    try:
        cap = int(pltpu.get_tpu_info().vmem_capacity_bytes)
    except Exception:
        cap = 64 << 20
    return max(16 << 20, min(64 << 20, cap // 2))


@functools.lru_cache(maxsize=None)
def _tile_budget_bytes():
    # Per-grid-step footprint budget (the per-lane/per-channel byte counts fed
    # to the pickers below already include double buffering + f32 temporaries).
    return min(_vmem_limit_bytes() // 2, 24 << 20)


def _pick_lane_tile(L, per_lane_bytes, budget_bytes):
    """Largest multiple-of-128 divisor of L (or L itself) fitting the budget."""
    cands = {L}
    t = 128
    while t <= L:
        if L % t == 0:
            cands.add(t)
        t += 128
    fitting = [t for t in cands if t * per_lane_bytes <= budget_bytes]
    return max(fitting) if fitting else min(cands)


def _pick_channel_tile(C, per_channel_bytes, budget_bytes):
    """Largest multiple-of-8 divisor of C (or C itself) fitting the budget."""
    cands = {C}
    t = 8
    while t <= C:
        if C % t == 0:
            cands.add(t)
        t += 8
    fitting = [t for t in cands if t * per_channel_bytes <= budget_bytes]
    return max(fitting) if fitting else min(cands)


# ---------------------------------------------------------------------------
# In-kernel exact-style GELU (erf via Abramowitz & Stegun 7.1.26, |err|<1.5e-7)
# Built only from exp/mul/add/where so it always lowers in Mosaic.
# ---------------------------------------------------------------------------
def _erf_approx(x):
    a1, a2, a3, a4, a5 = 0.254829592, -0.284496736, 1.421413741, -1.453152027, 1.061405429
    p = 0.3275911
    z = jnp.abs(x)
    t = 1.0 / (1.0 + p * z)
    poly = ((((a5 * t + a4) * t + a3) * t + a2) * t + a1) * t
    y = 1.0 - poly * jnp.exp(-z * z)
    return jnp.where(x < 0.0, -y, y)


def _gelu_erf(x):
    return 0.5 * x * (1.0 + _erf_approx(x * 0.7071067811865476))


# ---------------------------------------------------------------------------
# Kernel 1: LayerNorm over the channel axis, lane-dense over (B, C, H*W)
# ---------------------------------------------------------------------------
def _channel_ln_kernel(x_ref, w_ref, b_ref, o_ref, *, eps):
    x = x_ref[0].astype(jnp.float32)                       # (C, tl)
    inv_n = 1.0 / x.shape[0]
    mu = jnp.sum(x, axis=0, keepdims=True) * inv_n         # (1, tl)
    ex2 = jnp.sum(x * x, axis=0, keepdims=True) * inv_n    # one-pass stats
    var = jnp.maximum(ex2 - mu * mu, 0.0)
    y = (x - mu) * jax.lax.rsqrt(var + eps)
    w = w_ref[...].astype(jnp.float32)                     # (C, 1)
    b = b_ref[...].astype(jnp.float32)
    o_ref[0] = (w * y + b).astype(o_ref.dtype)


def channel_layernorm(x, weight, bias, *, eps=1e-5):
    B, C, H, W = x.shape
    L = H * W
    isz = jnp.dtype(x.dtype).itemsize
    per_lane = 4 * C * isz + 3 * C * 4            # x/out double-buffered + f32 temps
    tl = _pick_lane_tile(L, per_lane, _tile_budget_bytes())
    x2 = x.reshape(B, C, L)
    w2 = weight.reshape(C, 1).astype(x.dtype)
    b2 = bias.reshape(C, 1).astype(x.dtype)
    kernel = functools.partial(_channel_ln_kernel, eps=eps)
    out2 = pl.pallas_call(
        kernel,
        out_shape=jax.ShapeDtypeStruct((B, C, L), x.dtype),
        grid_spec=pltpu.PrefetchScalarGridSpec(
            num_scalar_prefetch=0,
            grid=(B, L // tl),
            in_specs=[
                pl.BlockSpec((1, C, tl), lambda b, j: (b, 0, j)),
                pl.BlockSpec((C, 1), lambda b, j: (0, 0)),
                pl.BlockSpec((C, 1), lambda b, j: (0, 0)),
            ],
            out_specs=pl.BlockSpec((1, C, tl), lambda b, j: (b, 0, j)),
        ),
        compiler_params=pltpu.CompilerParams(
            dimension_semantics=("parallel", "parallel"),
            vmem_limit_bytes=_vmem_limit_bytes()),
    )(x2, w2, b2)
    return out2.reshape(B, C, H, W)


# ---------------------------------------------------------------------------
# Kernel 2: 1x1 conv / per-pixel linear over channels with fused epilogues
# ---------------------------------------------------------------------------
def _pointwise_kernel(x_ref, w_ref, b_ref, *rest, activation, has_residual):
    if has_residual:
        r_ref, o_ref = rest
    else:
        (o_ref,) = rest
    x = x_ref[0]                                            # (Cin, tl), native dtype
    w = w_ref[...]                                          # (Cout, Cin), native dtype
    y = jnp.dot(w, x, preferred_element_type=jnp.float32)   # f32 accumulate
    y = y + b_ref[...].astype(jnp.float32)                  # (Cout, 1)
    if activation == "gelu":
        y = _gelu_erf(y)
    if has_residual:
        y = y + r_ref[0].astype(jnp.float32)
    o_ref[0] = y.astype(o_ref.dtype)


def pointwise_conv(x, weight, bias=None, *, activation=None, residual=None):
    """out[b,o,h,w] = act(sum_c weight[o,c]*x[b,c,h,w] + bias[o]) (+ residual)."""
    B, Cin, H, W = x.shape
    Cout = weight.shape[0]
    L = H * W
    isz = jnp.dtype(x.dtype).itemsize
    x2 = x.reshape(B, Cin, L)
    wmat = weight.astype(x.dtype)
    if bias is None:
        b2 = jnp.zeros((Cout, 1), jnp.float32)
    else:
        b2 = bias.reshape(Cout, 1).astype(jnp.float32)
    per_lane = 2 * Cin * isz + 2 * Cout * isz + 2 * Cout * 4
    if residual is not None:
        per_lane += 2 * Cout * isz
    fixed = 2 * Cout * Cin * isz + (8 * 128 * 4)
    tl = _pick_lane_tile(L, per_lane, max(_tile_budget_bytes() - fixed, 1 << 18))

    in_specs = [
        pl.BlockSpec((1, Cin, tl), lambda b, j: (b, 0, j)),
        pl.BlockSpec((Cout, Cin), lambda b, j: (0, 0)),
        pl.BlockSpec((Cout, 1), lambda b, j: (0, 0)),
    ]
    args = [x2, wmat, b2]
    if residual is not None:
        in_specs.append(pl.BlockSpec((1, Cout, tl), lambda b, j: (b, 0, j)))
        args.append(residual.reshape(B, Cout, L))

    kernel = functools.partial(_pointwise_kernel, activation=activation,
                               has_residual=residual is not None)
    out2 = pl.pallas_call(
        kernel,
        out_shape=jax.ShapeDtypeStruct((B, Cout, L), x.dtype),
        grid_spec=pltpu.PrefetchScalarGridSpec(
            num_scalar_prefetch=0,
            grid=(B, L // tl),
            in_specs=in_specs,
            out_specs=pl.BlockSpec((1, Cout, tl), lambda b, j: (b, 0, j)),
        ),
        compiler_params=pltpu.CompilerParams(
            dimension_semantics=("parallel", "parallel"),
            vmem_limit_bytes=_vmem_limit_bytes()),
    )(*args)
    return out2.reshape(B, Cout, H, W)


# ---------------------------------------------------------------------------
# Kernel 3: depthwise 3x3 conv (padding=1, stride=1), channel-tiled
# ---------------------------------------------------------------------------
def _dwconv3x3_kernel(x_ref, w_ref, b_ref, o_ref, *, H, W):
    x = x_ref[0].astype(jnp.float32)                 # (tc, H+2, W+2)
    w = w_ref[...].astype(jnp.float32)               # (tc, 3, 3)
    acc = jnp.zeros((x.shape[0], H, W), jnp.float32)
    for dy in range(3):
        for dx in range(3):
            tap = w[:, dy:dy + 1, dx:dx + 1]         # (tc, 1, 1)
            acc = acc + x[:, dy:dy + H, dx:dx + W] * tap
    acc = acc + b_ref[...].astype(jnp.float32)[:, :, None]   # (tc, 1, 1)
    o_ref[0] = acc.astype(o_ref.dtype)


def depthwise_conv3x3(x, weight, bias):
    """weight: (C, 3, 3), bias: (C,)."""
    B, C, H, W = x.shape
    isz = jnp.dtype(x.dtype).itemsize
    # TODO(synk): replace the wrapper jnp.pad with in-kernel boundary masking
    # (or an H-tiled halo DMA) to avoid materializing a padded copy in HBM.
    xp = jnp.pad(x, ((0, 0), (0, 0), (1, 1), (1, 1)))
    per_chan = 2 * (H + 2) * (W + 2) * isz + 2 * H * W * isz + H * W * 4
    tc = _pick_channel_tile(C, per_chan, _tile_budget_bytes())
    w3 = weight.astype(x.dtype)                      # (C, 3, 3)
    b2 = bias.reshape(C, 1).astype(jnp.float32)      # (C, 1)
    kernel = functools.partial(_dwconv3x3_kernel, H=H, W=W)
    return pl.pallas_call(
        kernel,
        out_shape=jax.ShapeDtypeStruct((B, C, H, W), x.dtype),
        grid_spec=pltpu.PrefetchScalarGridSpec(
            num_scalar_prefetch=0,
            grid=(B, C // tc),
            in_specs=[
                pl.BlockSpec((1, tc, H + 2, W + 2), lambda b, c: (b, c, 0, 0)),
                pl.BlockSpec((tc, 3, 3), lambda b, c: (c, 0, 0)),
                pl.BlockSpec((tc, 1), lambda b, c: (c, 0)),
            ],
            out_specs=pl.BlockSpec((1, tc, H, W), lambda b, c: (b, c, 0, 0)),
        ),
        compiler_params=pltpu.CompilerParams(
            dimension_semantics=("parallel", "parallel"),
            vmem_limit_bytes=_vmem_limit_bytes()),
    )(xp, w3, b2)


# ---------------------------------------------------------------------------
# Kernel 4a: mutual attention — streamed Gram matrix + softmax
#   attn[b,h,i,j] = softmax_j( (q_i . k_j) * rsqrt(|q_i|^2) * rsqrt(|k_j|^2) * temp_h )
# ---------------------------------------------------------------------------
def _attn_softmax_kernel(q_ref, k_ref, t_ref, attn_ref, gram_acc, qss_acc, kss_acc):
    l = pl.program_id(2)

    @pl.when(l == 0)
    def _():
        gram_acc[...] = jnp.zeros_like(gram_acc)
        qss_acc[...] = jnp.zeros_like(qss_acc)
        kss_acc[...] = jnp.zeros_like(kss_acc)

    q = q_ref[0, 0]                                   # (Ch, tl), native dtype into MXU
    k = k_ref[0, 0]
    gram_acc[...] += jax.lax.dot_general(
        q, k, (((1,), (1,)), ((), ())), preferred_element_type=jnp.float32)
    qf = q.astype(jnp.float32)
    kf = k.astype(jnp.float32)
    qss_acc[...] += jnp.sum(qf * qf, axis=-1, keepdims=True)
    kss_acc[...] += jnp.sum(kf * kf, axis=-1, keepdims=True)

    @pl.when(l == pl.num_programs(2) - 1)
    def _():
        temp = t_ref[0]                                # (1, 1)
        # 1/max(||x||, 1e-12) == rsqrt(max(||x||^2, 1e-24))  (F.normalize semantics)
        inv_q = jax.lax.rsqrt(jnp.maximum(qss_acc[...], 1e-24))   # (Ch, 1)
        inv_k = jax.lax.rsqrt(jnp.maximum(kss_acc[...], 1e-24))   # (Ch, 1)
        a = gram_acc[...] * (inv_q * temp)
        a = a * jnp.reshape(inv_k, (1, -1))
        m = jnp.max(a, axis=-1, keepdims=True)
        e = jnp.exp(a - m)
        attn_ref[0, 0] = (e / jnp.sum(e, axis=-1, keepdims=True)).astype(attn_ref.dtype)


def attention_softmax(q, k, temperature):
    """q, k: (B, Hh, Ch, L); temperature: (Hh, 1, 1). Returns attn (B, Hh, Ch, Ch) f32."""
    B, Hh, Ch, L = q.shape
    isz = jnp.dtype(q.dtype).itemsize
    per_lane = 4 * Ch * isz + 2 * Ch * 4
    tl = _pick_lane_tile(L, per_lane, _tile_budget_bytes())
    t3 = temperature.reshape(Hh, 1, 1).astype(jnp.float32)
    return pl.pallas_call(
        _attn_softmax_kernel,
        out_shape=jax.ShapeDtypeStruct((B, Hh, Ch, Ch), jnp.float32),
        grid_spec=pltpu.PrefetchScalarGridSpec(
            num_scalar_prefetch=0,
            grid=(B, Hh, L // tl),
            in_specs=[
                pl.BlockSpec((1, 1, Ch, tl), lambda b, h, l: (b, h, 0, l)),
                pl.BlockSpec((1, 1, Ch, tl), lambda b, h, l: (b, h, 0, l)),
                pl.BlockSpec((1, 1, 1), lambda b, h, l: (h, 0, 0)),
            ],
            out_specs=pl.BlockSpec((1, 1, Ch, Ch), lambda b, h, l: (b, h, 0, 0)),
            scratch_shapes=[pltpu.VMEM((Ch, Ch), jnp.float32),
                            pltpu.VMEM((Ch, 1), jnp.float32),
                            pltpu.VMEM((Ch, 1), jnp.float32)],
        ),
        compiler_params=pltpu.CompilerParams(
            dimension_semantics=("parallel", "parallel", "arbitrary"),
            vmem_limit_bytes=_vmem_limit_bytes()),
    )(q, k, t3)


# ---------------------------------------------------------------------------
# Kernel 4b: attn @ V  + project_out (1x1) + residual, streamed over L
# ---------------------------------------------------------------------------
def _attn_apply_project_kernel(attn_ref, v_ref, wo_ref, res_ref, o_ref):
    Hh = attn_ref.shape[1]
    acc = None
    for h in range(Hh):
        a = attn_ref[0, h]                               # (Ch, Ch) f32
        vh = v_ref[0, h]                                 # (Ch, tl) native dtype
        th = jnp.dot(a.astype(vh.dtype), vh, preferred_element_type=jnp.float32)
        w = wo_ref[h]                                    # (C, Ch) native dtype
        y = jnp.dot(w, th.astype(w.dtype), preferred_element_type=jnp.float32)
        acc = y if acc is None else acc + y
    o_ref[0] = (acc + res_ref[0].astype(jnp.float32)).astype(o_ref.dtype)


def attention_apply_project(attn, v, wo, residual):
    """attn: (B,Hh,Ch,Ch) f32; v: (B,Hh,Ch,L); wo: (C,C); residual: (B,C,H,W)."""
    B, Hh, Ch, L = v.shape
    C = Hh * Ch
    _, _, H, W = residual.shape
    isz = jnp.dtype(v.dtype).itemsize
    per_lane = 6 * C * isz + 2 * C * 4
    fixed = 2 * (Hh * Ch * Ch * 4 + C * C * isz)
    tl = _pick_lane_tile(L, per_lane, max(_tile_budget_bytes() - fixed, 1 << 18))
    # wo_split[h, o, c] = wo[o, h*Ch + c]
    wo_split = wo.reshape(C, Hh, Ch).transpose(1, 0, 2).astype(v.dtype)
    res2 = residual.reshape(B, C, L)
    out2 = pl.pallas_call(
        _attn_apply_project_kernel,
        out_shape=jax.ShapeDtypeStruct((B, C, L), v.dtype),
        grid_spec=pltpu.PrefetchScalarGridSpec(
            num_scalar_prefetch=0,
            grid=(B, L // tl),
            in_specs=[
                pl.BlockSpec((1, Hh, Ch, Ch), lambda b, j: (b, 0, 0, 0)),
                pl.BlockSpec((1, Hh, Ch, tl), lambda b, j: (b, 0, 0, j)),
                pl.BlockSpec((Hh, C, Ch), lambda b, j: (0, 0, 0)),
                pl.BlockSpec((1, C, tl), lambda b, j: (b, 0, j)),
            ],
            out_specs=pl.BlockSpec((1, C, tl), lambda b, j: (b, 0, j)),
        ),
        compiler_params=pltpu.CompilerParams(
            dimension_semantics=("parallel", "parallel"),
            vmem_limit_bytes=_vmem_limit_bytes()),
    )(attn, v, wo_split, res2)
    return out2.reshape(B, C, H, W)


# ---------------------------------------------------------------------------
# FICA forward (image, flow both NCHW)
# ---------------------------------------------------------------------------
def fica_forward(image, flow, params, *, num_heads):
    B, C, H, W = flow.shape
    Hh, Ch, L = num_heads, C // num_heads, H * W

    # fused = flow + attn(norm1_image(flow), norm1_flow(image))
    xq = channel_layernorm(flow, params['norm1_image_w'], params['norm1_image_b'])
    ykv = channel_layernorm(image, params['norm1_flow_w'], params['norm1_flow_b'])

    q = depthwise_conv3x3(pointwise_conv(xq, params['wq']), params['dq_w'], params['dq_b'])
    k = depthwise_conv3x3(pointwise_conv(ykv, params['wk']), params['dk_w'], params['dk_b'])
    v = depthwise_conv3x3(pointwise_conv(ykv, params['wv']), params['dv_w'], params['dv_b'])

    attn = attention_softmax(q.reshape(B, Hh, Ch, L), k.reshape(B, Hh, Ch, L),
                             params['temperature'])
    # attn@V + project_out + residual add fused in one streamed kernel.
    fused = attention_apply_project(attn, v.reshape(B, Hh, Ch, L), params['wo'], flow)

    # FFN branch: norm2 (channel LN) -> fc1+GELU (fused) -> fc2+residual (fused)
    z = channel_layernorm(fused, params['norm2_w'], params['norm2_b'])
    h1 = pointwise_conv(z, params['fc1_w'], params['fc1_b'], activation="gelu")
    out = pointwise_conv(h1, params['fc2_w'], params['fc2_b'], residual=fused)
    return out


# ---------------------------------------------------------------------------
# Pure-JAX reference (mirrors the PyTorch module)
# ---------------------------------------------------------------------------
def _reference_fica(image, flow, p, num_heads):
    hp = jax.lax.Precision.HIGHEST

    def chan_ln(x, w, b, eps=1e-5):
        mu = jnp.mean(x, axis=1, keepdims=True)
        var = jnp.mean((x - mu) ** 2, axis=1, keepdims=True)
        return (x - mu) / jnp.sqrt(var + eps) * w.reshape(1, -1, 1, 1) + b.reshape(1, -1, 1, 1)

    def pw(x, w, b=None):
        y = jnp.einsum('oc,bchw->bohw', w, x, precision=hp)
        return y if b is None else y + b.reshape(1, -1, 1, 1)

    def dw3(x, w, b):
        B, C, H, W = x.shape
        xp = jnp.pad(x, ((0, 0), (0, 0), (1, 1), (1, 1)))
        out = jnp.zeros_like(x)
        for dy in range(3):
            for dx in range(3):
                out = out + xp[:, :, dy:dy + H, dx:dx + W] * w[:, dy, dx][None, :, None, None]
        return out + b.reshape(1, -1, 1, 1)

    B, C, H, W = flow.shape
    Hh, Ch, L = num_heads, C // num_heads, H * W
    x = chan_ln(flow, p['norm1_image_w'], p['norm1_image_b'])
    y = chan_ln(image, p['norm1_flow_w'], p['norm1_flow_b'])
    q = dw3(pw(x, p['wq']), p['dq_w'], p['dq_b']).reshape(B, Hh, Ch, L)
    k = dw3(pw(y, p['wk']), p['dk_w'], p['dk_b']).reshape(B, Hh, Ch, L)
    v = dw3(pw(y, p['wv']), p['dv_w'], p['dv_b']).reshape(B, Hh, Ch, L)

    def l2n(t):
        return t / jnp.maximum(jnp.linalg.norm(t, axis=-1, keepdims=True), 1e-12)

    attn = jnp.einsum('bhid,bhjd->bhij', l2n(q), l2n(k), precision=hp)
    attn = attn * p['temperature'].reshape(1, Hh, 1, 1)
    attn = jax.nn.softmax(attn, axis=-1)
    out = jnp.einsum('bhij,bhjd->bhid', attn, v, precision=hp).reshape(B, C, H, W)
    fused = flow + pw(out, p['wo'])

    z = chan_ln(fused, p['norm2_w'], p['norm2_b'])
    h1 = jax.nn.gelu(pw(z, p['fc1_w'], p['fc1_b']), approximate=False)
    h2 = pw(h1, p['fc2_w'], p['fc2_b'])
    return fused + h2


# ---------------------------------------------------------------------------
if __name__ == "__main__":
    key = jax.random.PRNGKey(0)
    B, C, H, W = 2, 4, 16, 16
    num_heads = 2
    hidden = C * 2  # ffn_expansion_factor = 2

    keys = jax.random.split(key, 18)
    image = jax.random.normal(keys[0], (B, C, H, W), jnp.float32)
    flow = jax.random.normal(keys[1], (B, C, H, W), jnp.float32)

    def nrm(k, shape, scale=0.3):
        return scale * jax.random.normal(k, shape, jnp.float32)

    ar = lambda n: jnp.arange(n, dtype=jnp.float32)
    params = dict(
        norm1_image_w=1.0 + 0.10 * ar(C), norm1_image_b=0.05 * ar(C),
        norm1_flow_w=1.0 - 0.05 * ar(C), norm1_flow_b=-0.03 * ar(C),
        wq=nrm(keys[2], (C, C)), wk=nrm(keys[3], (C, C)), wv=nrm(keys[4], (C, C)),
        dq_w=nrm(keys[5], (C, 3, 3)), dq_b=nrm(keys[6], (C,), 0.1),
        dk_w=nrm(keys[7], (C, 3, 3)), dk_b=nrm(keys[8], (C,), 0.1),
        dv_w=nrm(keys[9], (C, 3, 3)), dv_b=nrm(keys[10], (C,), 0.1),
        temperature=(1.0 + 0.1 * ar(num_heads)).reshape(num_heads, 1, 1),
        wo=nrm(keys[11], (C, C)),
        norm2_w=1.0 + 0.02 * ar(C), norm2_b=0.01 * ar(C),
        fc1_w=nrm(keys[12], (hidden, C)), fc1_b=nrm(keys[13], (hidden,), 0.1),
        fc2_w=nrm(keys[14], (C, hidden)), fc2_b=nrm(keys[15], (C,), 0.1),
    )

    fica = jax.jit(functools.partial(fica_forward, num_heads=num_heads))
    out = jax.block_until_ready(fica(image, flow, params))

    ref = _reference_fica(image, flow, params, num_heads)
    assert out.shape == (B, C, H, W)
    assert jnp.allclose(out, ref, atol=2e-3, rtol=2e-3), "mismatch vs reference"

    print("KERNEL_OK")
</pallas_src>

<mosaic_0001>
module attributes {stable_mosaic.version = 11 : i64} {
  func.func @_channel_ln_kernel(%arg0: i32, %arg1: i32, %arg2: memref<1x4x256xf32, #tpu.memory_space<vmem>>, %arg3: memref<4x1xf32, #tpu.memory_space<vmem>>, %arg4: memref<4x1xf32, #tpu.memory_space<vmem>>, %arg5: memref<1x4x256xf32, #tpu.memory_space<vmem>>) attributes {dimension_semantics = [#tpu.dimension_semantics<parallel>, #tpu.dimension_semantics<parallel>], iteration_bounds = array<i64: 2, 1>, scalar_prefetch = 0 : i64, scratch_operands = 0 : i64, tpu.core_type = #tpu.core_type<tc>, window_params = [{transform_indices = @transform_0, window_bounds = array<i64: 1, 4, 256>}, {pipeline_mode = #tpu.pipeline_mode<synchronous>, transform_indices = @transform_1, window_bounds = array<i64: 4, 1>}, {pipeline_mode = #tpu.pipeline_mode<synchronous>, transform_indices = @transform_2, window_bounds = array<i64: 4, 1>}, {transform_indices = @transform_3, window_bounds = array<i64: 1, 4, 256>}]} {
    %c0 = arith.constant 0 : index
    %c0_0 = arith.constant 0 : index
    %c0_1 = arith.constant 0 : index
    %0 = vector.load %arg2[%c0, %c0_0, %c0_1] : memref<1x4x256xf32, #tpu.memory_space<vmem>>, vector<1x4x256xf32>
    %1 = vector.shape_cast %0 : vector<1x4x256xf32> to vector<4x256xf32>
    %cst = arith.constant dense<0.000000e+00> : vector<256xf32>
    %2 = vector.multi_reduction <add>, %1, %cst [0] : vector<4x256xf32> to vector<256xf32>
    %3 = vector.shape_cast %2 : vector<256xf32> to vector<1x256xf32>
    %cst_2 = arith.constant 2.500000e-01 : f32
    %4 = vector.broadcast %cst_2 : f32 to vector<1x256xf32>
    %5 = arith.mulf %3, %4 : vector<1x256xf32>
    %6 = arith.mulf %1, %1 : vector<4x256xf32>
    %cst_3 = arith.constant dense<0.000000e+00> : vector<256xf32>
    %7 = vector.multi_reduction <add>, %6, %cst_3 [0] : vector<4x256xf32> to vector<256xf32>
    %8 = vector.shape_cast %7 : vector<256xf32> to vector<1x256xf32>
    %cst_4 = arith.constant 2.500000e-01 : f32
    %9 = vector.broadcast %cst_4 : f32 to vector<1x256xf32>
    %10 = arith.mulf %8, %9 : vector<1x256xf32>
    %11 = arith.mulf %5, %5 : vector<1x256xf32>
    %12 = arith.subf %10, %11 : vector<1x256xf32>
    %cst_5 = arith.constant 0.000000e+00 : f32
    %13 = vector.broadcast %cst_5 : f32 to vector<1x256xf32>
    %14 = arith.maximumf %12, %13 : vector<1x256xf32>
    %15 = vector.broadcast %5 : vector<1x256xf32> to vector<4x256xf32>
    %16 = arith.subf %1, %15 : vector<4x256xf32>
    %cst_6 = arith.constant 9.99999974E-6 : f32
    %17 = vector.broadcast %cst_6 : f32 to vector<1x256xf32>
    %18 = arith.addf %14, %17 : vector<1x256xf32>
    %19 = math.rsqrt %18 : vector<1x256xf32>
    %20 = vector.broadcast %19 : vector<1x256xf32> to vector<4x256xf32>
    %21 = arith.mulf %16, %20 : vector<4x256xf32>
    %c0_7 = arith.constant 0 : index
    %c0_8 = arith.constant 0 : index
    %22 = vector.load %arg3[%c0_7, %c0_8] : memref<4x1xf32, #tpu.memory_space<vmem>>, vector<4x1xf32>
    %c0_9 = arith.constant 0 : index
    %c0_10 = arith.constant 0 : index
    %23 = vector.load %arg4[%c0_9, %c0_10] : memref<4x1xf32, #tpu.memory_space<vmem>>, vector<4x1xf32>
    %24 = vector.broadcast %22 : vector<4x1xf32> to vector<4x256xf32>
    %25 = arith.mulf %24, %21 : vector<4x256xf32>
    %26 = vector.broadcast %23 : vector<4x1xf32> to vector<4x256xf32>
    %27 = arith.addf %25, %26 : vector<4x256xf32>
    %c0_11 = arith.constant 0 : index
    %c0_12 = arith.constant 0 : index
    %c0_13 = arith.constant 0 : index
    %28 = vector.load %arg5[%c0_11, %c0_12, %c0_13] : memref<1x4x256xf32, #tpu.memory_space<vmem>>, vector<1x4x256xf32>
    %29 = vector.shape_cast %28 : vector<1x4x256xf32> to vector<4x256xf32>
    %30 = vector.shape_cast %27 : vector<4x256xf32> to vector<1x4x256xf32>
    tpu.vector_store %arg5[%c0_11, %c0_12, %c0_13], %30 {strides = array<i32>} : memref<1x4x256xf32, #tpu.memory_space<vmem>>, vector<1x4x256xf32>,
    return
  }
  func.func @transform_0(%arg0: i32, %arg1: i32) -> (i32, i32, i32) {
    %c0_i32 = arith.constant 0 : i32
    %c0_i32_0 = arith.constant 0 : i32
    return %arg0, %c0_i32, %arg1 : i32, i32, i32
  }
  func.func @transform_1(%arg0: i32, %arg1: i32) -> (i32, i32) {
    %c0_i32 = arith.constant 0 : i32
    %c0_i32_0 = arith.constant 0 : i32
    %c0_i32_1 = arith.constant 0 : i32
    return %c0_i32, %c0_i32_0 : i32, i32
  }
  func.func @transform_2(%arg0: i32, %arg1: i32) -> (i32, i32) {
    %c0_i32 = arith.constant 0 : i32
    %c0_i32_0 = arith.constant 0 : i32
    %c0_i32_1 = arith.constant 0 : i32
    return %c0_i32, %c0_i32_0 : i32, i32
  }
  func.func @transform_3(%arg0: i32, %arg1: i32) -> (i32, i32, i32) {
    %c0_i32 = arith.constant 0 : i32
    %c0_i32_0 = arith.constant 0 : i32
    return %arg0, %c0_i32, %arg1 : i32, i32, i32
  }
}

module attributes {stable_mosaic.version = 11 : i64} {
  func.func @_pointwise_kernel(%arg0: i32, %arg1: i32, %arg2: memref<1x4x256xf32, #tpu.memory_space<vmem>>, %arg3: memref<4x4xf32, #tpu.memory_space<vmem>>, %arg4: memref<4x1xf32, #tpu.memory_space<vmem>>, %arg5: memref<1x4x256xf32, #tpu.memory_space<vmem>>) attributes {dimension_semantics = [#tpu.dimension_semantics<parallel>, #tpu.dimension_semantics<parallel>], iteration_bounds = array<i64: 2, 1>, scalar_prefetch = 0 : i64, scratch_operands = 0 : i64, tpu.core_type = #tpu.core_type<tc>, window_params = [{transform_indices = @transform_0, window_bounds = array<i64: 1, 4, 256>}, {pipeline_mode = #tpu.pipeline_mode<synchronous>, transform_indices = @transform_1, window_bounds = array<i64: 4, 4>}, {pipeline_mode = #tpu.pipeline_mode<synchronous>, transform_indices = @transform_2, window_bounds = array<i64: 4, 1>}, {transform_indices = @transform_3, window_bounds = array<i64: 1, 4, 256>}]} {
    %c0 = arith.constant 0 : index
    %c0_0 = arith.constant 0 : index
    %c0_1 = arith.constant 0 : index
    %0 = vector.load %arg2[%c0, %c0_0, %c0_1] : memref<1x4x256xf32, #tpu.memory_space<vmem>>, vector<1x4x256xf32>
    %1 = vector.shape_cast %0 : vector<1x4x256xf32> to vector<4x256xf32>
    %c0_2 = arith.constant 0 : index
    %c0_3 = arith.constant 0 : index
    %2 = vector.load %arg3[%c0_2, %c0_3] : memref<4x4xf32, #tpu.memory_space<vmem>>, vector<4x4xf32>
    %cst = arith.constant dense<0.000000e+00> : vector<4x256xf32>
    %3 = tpu.matmul %2, %1, %cst {dimension_numbers = #tpu.dot_dimension_numbers<[1], [0], [0], [1], [0, 0, 1, 1], [], []>} : vector<4x4xf32>, vector<4x256xf32>, vector<4x256xf32> -> vector<4x256xf32>
    %c0_4 = arith.constant 0 : index
    %c0_5 = arith.constant 0 : index
    %4 = vector.load %arg4[%c0_4, %c0_5] : memref<4x1xf32, #tpu.memory_space<vmem>>, vector<4x1xf32>
    %5 = vector.broadcast %4 : vector<4x1xf32> to vector<4x256xf32>
    %6 = arith.addf %3, %5 : vector<4x256xf32>
    %c0_6 = arith.constant 0 : index
    %c0_7 = arith.constant 0 : index
    %c0_8 = arith.constant 0 : index
    %7 = vector.load %arg5[%c0_6, %c0_7, %c0_8] : memref<1x4x256xf32, #tpu.memory_space<vmem>>, vector<1x4x256xf32>
    %8 = vector.shape_cast %7 : vector<1x4x256xf32> to vector<4x256xf32>
    %9 = vector.shape_cast %6 : vector<4x256xf32> to vector<1x4x256xf32>
    tpu.vector_store %arg5[%c0_6, %c0_7, %c0_8], %9 {strides = array<i32>} : memref<1x4x256xf32, #tpu.memory_space<vmem>>, vector<1x4x256xf32>,
    return
  }
  func.func @transform_0(%arg0: i32, %arg1: i32) -> (i32, i32, i32) {
    %c0_i32 = arith.constant 0 : i32
    %c0_i32_0 = arith.constant 0 : i32
    return %arg0, %c0_i32, %arg1 : i32, i32, i32
  }
  func.func @transform_1(%arg0: i32, %arg1: i32) -> (i32, i32) {
    %c0_i32 = arith.constant 0 : i32
    %c0_i32_0 = arith.constant 0 : i32
    %c0_i32_1 = arith.constant 0 : i32
    return %c0_i32, %c0_i32_0 : i32, i32
  }
  func.func @transform_2(%arg0: i32, %arg1: i32) -> (i32, i32) {
    %c0_i32 = arith.constant 0 : i32
    %c0_i32_0 = arith.constant 0 : i32
    %c0_i32_1 = arith.constant 0 : i32
    return %c0_i32, %c0_i32_0 : i32, i32
  }
  func.func @transform_3(%arg0: i32, %arg1: i32) -> (i32, i32, i32) {
    %c0_i32 = arith.constant 0 : i32
    %c0_i32_0 = arith.constant 0 : i32
    return %arg0, %c0_i32, %arg1 : i32, i32, i32
  }
}

module attributes {stable_mosaic.version = 11 : i64} {
  func.func @_dwconv3x3_kernel(%arg0: i32, %arg1: i32, %arg2: memref<1x4x18x18xf32, #tpu.memory_space<vmem>>, %arg3: memref<4x3x3xf32, #tpu.memory_space<vmem>>, %arg4: memref<4x1xf32, #tpu.memory_space<vmem>>, %arg5: memref<1x4x16x16xf32, #tpu.memory_space<vmem>>) attributes {dimension_semantics = [#tpu.dimension_semantics<parallel>, #tpu.dimension_semantics<parallel>], iteration_bounds = array<i64: 2, 1>, scalar_prefetch = 0 : i64, scratch_operands = 0 : i64, tpu.core_type = #tpu.core_type<tc>, window_params = [{transform_indices = @transform_0, window_bounds = array<i64: 1, 4, 18, 18>}, {transform_indices = @transform_1, window_bounds = array<i64: 4, 3, 3>}, {transform_indices = @transform_2, window_bounds = array<i64: 4, 1>}, {transform_indices = @transform_3, window_bounds = array<i64: 1, 4, 16, 16>}]} {
    %c0 = arith.constant 0 : index
    %c0_0 = arith.constant 0 : index
    %c0_1 = arith.constant 0 : index
    %c0_2 = arith.constant 0 : index
    %0 = vector.load %arg2[%c0, %c0_0, %c0_1, %c0_2] : memref<1x4x18x18xf32, #tpu.memory_space<vmem>>, vector<1x4x18x18xf32>
    %1 = vector.shape_cast %0 : vector<1x4x18x18xf32> to vector<4x18x18xf32>
    %c0_3 = arith.constant 0 : index
    %c0_4 = arith.constant 0 : index
    %c0_5 = arith.constant 0 : index
    %2 = vector.load %arg3[%c0_3, %c0_4, %c0_5] : memref<4x3x3xf32, #tpu.memory_space<vmem>>, vector<4x3x3xf32>
    %cst = arith.constant 0.000000e+00 : f32
    %3 = vector.broadcast %cst : f32 to vector<4x16x16xf32>
    %4 = vector.extract_strided_slice %2 {offsets = [0, 0, 0], sizes = [4, 1, 1], strides = [1, 1, 1]} : vector<4x3x3xf32> to vector<4x1x1xf32>
    %5 = vector.extract_strided_slice %1 {offsets = [0, 0, 0], sizes = [4, 16, 16], strides = [1, 1, 1]} : vector<4x18x18xf32> to vector<4x16x16xf32>
    %6 = vector.broadcast %4 : vector<4x1x1xf32> to vector<4x16x16xf32>
    %7 = arith.mulf %5, %6 : vector<4x16x16xf32>
    %8 = arith.addf %3, %7 : vector<4x16x16xf32>
    %9 = vector.extract_strided_slice %2 {offsets = [0, 0, 1], sizes = [4, 1, 1], strides = [1, 1, 1]} : vector<4x3x3xf32> to vector<4x1x1xf32>
    %10 = vector.extract_strided_slice %1 {offsets = [0, 0, 1], sizes = [4, 16, 16], strides = [1, 1, 1]} : vector<4x18x18xf32> to vector<4x16x16xf32>
    %11 = vector.broadcast %9 : vector<4x1x1xf32> to vector<4x16x16xf32>
    %12 = arith.mulf %10, %11 : vector<4x16x16xf32>
    %13 = arith.addf %8, %12 : vector<4x16x16xf32>
    %14 = vector.extract_strided_slice %2 {offsets = [0, 0, 2], sizes = [4, 1, 1], strides = [1, 1, 1]} : vector<4x3x3xf32> to vector<4x1x1xf32>
    %15 = vector.extract_strided_slice %1 {offsets = [0, 0, 2], sizes = [4, 16, 16], strides = [1, 1, 1]} : vector<4x18x18xf32> to vector<4x16x16xf32>
    %16 = vector.broadcast %14 : vector<4x1x1xf32> to vector<4x16x16xf32>
    %17 = arith.mulf %15, %16 : vector<4x16x16xf32>
    %18 = arith.addf %13, %17 : vector<4x16x16xf32>
    %19 = vector.extract_strided_slice %2 {offsets = [0, 1, 0], sizes = [4, 1, 1], strides = [1, 1, 1]} : vector<4x3x3xf32> to vector<4x1x1xf32>
    %20 = vector.extract_strided_slice %1 {offsets = [0, 1, 0], sizes = [4, 16, 16], strides = [1, 1, 1]} : vector<4x18x18xf32> to vector<4x16x16xf32>
    %21 = vector.broadcast %19 : vector<4x1x1xf32> to vector<4x16x16xf32>
    %22 = arith.mulf %20, %21 : vector<4x16x16xf32>
    %23 = arith.addf %18, %22 : vector<4x16x16xf32>
    %24 = vector.extract_strided_slice %2 {offsets = [0, 1, 1], sizes = [4, 1, 1], strides = [1, 1, 1]} : vector<4x3x3xf32> to vector<4x1x1xf32>
    %25 = vector.extract_strided_slice %1 {offsets = [0, 1, 1], sizes = [4, 16, 16], strides = [1, 1, 1]} : vector<4x18x18xf32> to vector<4x16x16xf32>
    %26 = vector.broadcast %24 : vector<4x1x1xf32> to vector<4x16x16xf32>
    %27 = arith.mulf %25, %26 : vector<4x16x16xf32>
    %28 = arith.addf %23, %27 : vector<4x16x16xf32>
    %29 = vector.extract_strided_slice %2 {offsets = [0, 1, 2], sizes = [4, 1, 1], strides = [1, 1, 1]} : vector<4x3x3xf32> to vector<4x1x1xf32>
    %30 = vector.extract_strided_slice %1 {offsets = [0, 1, 2], sizes = [4, 16, 16], strides = [1, 1, 1]} : vector<4x18x18xf32> to vector<4x16x16xf32>
    %31 = vector.broadcast %29 : vector<4x1x1xf32> to vector<4x16x16xf32>
    %32 = arith.mulf %30, %31 : vector<4x16x16xf32>
    %33 = arith.addf %28, %32 : vector<4x16x16xf32>
    %34 = vector.extract_strided_slice %2 {offsets = [0, 2, 0], sizes = [4, 1, 1], strides = [1, 1, 1]} : vector<4x3x3xf32> to vector<4x1x1xf32>
    %35 = vector.extract_strided_slice %1 {offsets = [0, 2, 0], sizes = [4, 16, 16], strides = [1, 1, 1]} : vector<4x18x18xf32> to vector<4x16x16xf32>
    %36 = vector.broadcast %34 : vector<4x1x1xf32> to vector<4x16x16xf32>
    %37 = arith.mulf %35, %36 : vector<4x16x16xf32>
    %38 = arith.addf %33, %37 : vector<4x16x16xf32>
    %39 = vector.extract_strided_slice %2 {offsets = [0, 2, 1], sizes = [4, 1, 1], strides = [1, 1, 1]} : vector<4x3x3xf32> to vector<4x1x1xf32>
    %40 = vector.extract_strided_slice %1 {offsets = [0, 2, 1], sizes = [4, 16, 16], strides = [1, 1, 1]} : vector<4x18x18xf32> to vector<4x16x16xf32>
    %41 = vector.broadcast %39 : vector<4x1x1xf32> to vector<4x16x16xf32>
    %42 = arith.mulf %40, %41 : vector<4x16x16xf32>
    %43 = arith.addf %38, %42 : vector<4x16x16xf32>
    %44 = vector.extract_strided_slice %2 {offsets = [0, 2, 2], sizes = [4, 1, 1], strides = [1, 1, 1]} : vector<4x3x3xf32> to vector<4x1x1xf32>
    %45 = vector.extract_strided_slice %1 {offsets = [0, 2, 2], sizes = [4, 16, 16], strides = [1, 1, 1]} : vector<4x18x18xf32> to vector<4x16x16xf32>
    %46 = vector.broadcast %44 : vector<4x1x1xf32> to vector<4x16x16xf32>
    %47 = arith.mulf %45, %46 : vector<4x16x16xf32>
    %48 = arith.addf %43, %47 : vector<4x16x16xf32>
    %c0_6 = arith.constant 0 : index
    %c0_7 = arith.constant 0 : index
    %49 = vector.load %arg4[%c0_6, %c0_7] : memref<4x1xf32, #tpu.memory_space<vmem>>, vector<4x1xf32>
    %50 = vector.shape_cast %49 : vector<4x1xf32> to vector<4x1x1xf32>
    %51 = vector.broadcast %50 : vector<4x1x1xf32> to vector<4x16x16xf32>
    %52 = arith.addf %48, %51 : vector<4x16x16xf32>
    %c0_8 = arith.constant 0 : index
    %c0_9 = arith.constant 0 : index
    %c0_10 = arith.constant 0 : index
    %c0_11 = arith.constant 0 : index
    %53 = vector.load %arg5[%c0_8, %c0_9, %c0_10, %c0_11] : memref<1x4x16x16xf32, #tpu.memory_space<vmem>>, vector<1x4x16x16xf32>
    %54 = vector.shape_cast %53 : vector<1x4x16x16xf32> to vector<4x16x16xf32>
    %55 = vector.shape_cast %52 : vector<4x16x16xf32> to vector<1x4x16x16xf32>
    tpu.vector_store %arg5[%c0_8, %c0_9, %c0_10, %c0_11], %55 {strides = array<i32>} : memref<1x4x16x16xf32, #tpu.memory_space<vmem>>, vector<1x4x16x16xf32>,
    return
  }
  func.func @transform_0(%arg0: i32, %arg1: i32) -> (i32, i32, i32, i32) {
    %c0_i32 = arith.constant 0 : i32
    %c0_i32_0 = arith.constant 0 : i32
    %c0_i32_1 = arith.constant 0 : i32
    return %arg0, %arg1, %c0_i32, %c0_i32_0 : i32, i32, i32, i32
  }
  func.func @transform_1(%arg0: i32, %arg1: i32) -> (i32, i32, i32) {
    %c0_i32 = arith.constant 0 : i32
    %c0_i32_0 = arith.constant 0 : i32
    %c0_i32_1 = arith.constant 0 : i32
    return %arg1, %c0_i32, %c0_i32_0 : i32, i32, i32
  }
  func.func @transform_2(%arg0: i32, %arg1: i32) -> (i32, i32) {
    %c0_i32 = arith.constant 0 : i32
    %c0_i32_0 = arith.constant 0 : i32
    return %arg1, %c0_i32 : i32, i32
  }
  func.func @transform_3(%arg0: i32, %arg1: i32) -> (i32, i32, i32, i32) {
    %c0_i32 = arith.constant 0 : i32
    %c0_i32_0 = arith.constant 0 : i32
    %c0_i32_1 = arith.constant 0 : i32
    return %arg0, %arg1, %c0_i32, %c0_i32_0 : i32, i32, i32, i32
  }
}

module attributes {stable_mosaic.version = 11 : i64} {
  func.func @_attn_apply_project_kernel(%arg0: i32, %arg1: i32, %arg2: memref<1x2x2x2xf32, #tpu.memory_space<vmem>>, %arg3: memref<1x2x2x256xf32, #tpu.memory_space<vmem>>, %arg4: memref<2x4x2xf32, #tpu.memory_space<vmem>>, %arg5: memref<1x4x256xf32, #tpu.memory_space<vmem>>, %arg6: memref<1x4x256xf32, #tpu.memory_space<vmem>>) attributes {dimension_semantics = [#tpu.dimension_semantics<parallel>, #tpu.dimension_semantics<parallel>], iteration_bounds = array<i64: 2, 1>, scalar_prefetch = 0 : i64, scratch_operands = 0 : i64, tpu.core_type = #tpu.core_type<tc>, window_params = [{transform_indices = @transform_0, window_bounds = array<i64: 1, 2, 2, 2>}, {transform_indices = @transform_1, window_bounds = array<i64: 1, 2, 2, 256>}, {pipeline_mode = #tpu.pipeline_mode<synchronous>, transform_indices = @transform_2, window_bounds = array<i64: 2, 4, 2>}, {transform_indices = @transform_3, window_bounds = array<i64: 1, 4, 256>}, {transform_indices = @transform_4, window_bounds = array<i64: 1, 4, 256>}]} {
    %c0 = arith.constant 0 : index
    %c0_0 = arith.constant 0 : index
    %c0_1 = arith.constant 0 : index
    %c0_2 = arith.constant 0 : index
    %0 = vector.load %arg2[%c0, %c0_0, %c0_1, %c0_2] : memref<1x2x2x2xf32, #tpu.memory_space<vmem>>, vector<1x1x2x2xf32>
    %1 = vector.shape_cast %0 : vector<1x1x2x2xf32> to vector<2x2xf32>
    %c0_3 = arith.constant 0 : index
    %c0_4 = arith.constant 0 : index
    %c0_5 = arith.constant 0 : index
    %c0_6 = arith.constant 0 : index
    %2 = vector.load %arg3[%c0_3, %c0_4, %c0_5, %c0_6] : memref<1x2x2x256xf32, #tpu.memory_space<vmem>>, vector<1x1x2x256xf32>
    %3 = vector.shape_cast %2 : vector<1x1x2x256xf32> to vector<2x256xf32>
    %cst = arith.constant dense<0.000000e+00> : vector<2x256xf32>
    %4 = tpu.matmul %1, %3, %cst {dimension_numbers = #tpu.dot_dimension_numbers<[1], [0], [0], [1], [0, 0, 1, 1], [], []>} : vector<2x2xf32>, vector<2x256xf32>, vector<2x256xf32> -> vector<2x256xf32>
    %c0_7 = arith.constant 0 : index
    %c0_8 = arith.constant 0 : index
    %c0_9 = arith.constant 0 : index
    %5 = vector.load %arg4[%c0_7, %c0_8, %c0_9] : memref<2x4x2xf32, #tpu.memory_space<vmem>>, vector<1x4x2xf32>
    %6 = vector.shape_cast %5 : vector<1x4x2xf32> to vector<4x2xf32>
    %cst_10 = arith.constant dense<0.000000e+00> : vector<4x256xf32>
    %7 = tpu.matmul %6, %4, %cst_10 {dimension_numbers = #tpu.dot_dimension_numbers<[1], [0], [0], [1], [0, 0, 1, 1], [], []>} : vector<4x2xf32>, vector<2x256xf32>, vector<4x256xf32> -> vector<4x256xf32>
    %c0_11 = arith.constant 0 : index
    %c1 = arith.constant 1 : index
    %c0_12 = arith.constant 0 : index
    %c0_13 = arith.constant 0 : index
    %8 = vector.load %arg2[%c0_11, %c1, %c0_12, %c0_13] : memref<1x2x2x2xf32, #tpu.memory_space<vmem>>, vector<1x1x2x2xf32>
    %9 = vector.shape_cast %8 : vector<1x1x2x2xf32> to vector<2x2xf32>
    %c0_14 = arith.constant 0 : index
    %c1_15 = arith.constant 1 : index
    %c0_16 = arith.constant 0 : index
    %c0_17 = arith.constant 0 : index
    %10 = vector.load %arg3[%c0_14, %c1_15, %c0_16, %c0_17] : memref<1x2x2x256xf32, #tpu.memory_space<vmem>>, vector<1x1x2x256xf32>
    %11 = vector.shape_cast %10 : vector<1x1x2x256xf32> to vector<2x256xf32>
    %cst_18 = arith.constant dense<0.000000e+00> : vector<2x256xf32>
    %12 = tpu.matmul %9, %11, %cst_18 {dimension_numbers = #tpu.dot_dimension_numbers<[1], [0], [0], [1], [0, 0, 1, 1], [], []>} : vector<2x2xf32>, vector<2x256xf32>, vector<2x256xf32> -> vector<2x256xf32>
    %c1_19 = arith.constant 1 : index
    %c0_20 = arith.constant 0 : index
    %c0_21 = arith.constant 0 : index
    %13 = vector.load %arg4[%c1_19, %c0_20, %c0_21] : memref<2x4x2xf32, #tpu.memory_space<vmem>>, vector<1x4x2xf32>
    %14 = vector.shape_cast %13 : vector<1x4x2xf32> to vector<4x2xf32>
    %cst_22 = arith.constant dense<0.000000e+00> : vector<4x256xf32>
    %15 = tpu.matmul %14, %12, %cst_22 {dimension_numbers = #tpu.dot_dimension_numbers<[1], [0], [0], [1], [0, 0, 1, 1], [], []>} : vector<4x2xf32>, vector<2x256xf32>, vector<4x256xf32> -> vector<4x256xf32>
    %16 = arith.addf %7, %15 : vector<4x256xf32>
    %c0_23 = arith.constant 0 : index
    %c0_24 = arith.constant 0 : index
    %c0_25 = arith.constant 0 : index
    %17 = vector.load %arg5[%c0_23, %c0_24, %c0_25] : memref<1x4x256xf32, #tpu.memory_space<vmem>>, vector<1x4x256xf32>
    %18 = vector.shape_cast %17 : vector<1x4x256xf32> to vector<4x256xf32>
    %19 = arith.addf %16, %18 : vector<4x256xf32>
    %c0_26 = arith.constant 0 : index
    %c0_27 = arith.constant 0 : index
    %c0_28 = arith.constant 0 : index
    %20 = vector.load %arg6[%c0_26, %c0_27, %c0_28] : memref<1x4x256xf32, #tpu.memory_space<vmem>>, vector<1x4x256xf32>
    %21 = vector.shape_cast %20 : vector<1x4x256xf32> to vector<4x256xf32>
    %22 = vector.shape_cast %19 : vector<4x256xf32> to vector<1x4x256xf32>
    tpu.vector_store %arg6[%c0_26, %c0_27, %c0_28], %22 {strides = array<i32>} : memref<1x4x256xf32, #tpu.memory_space<vmem>>, vector<1x4x256xf32>,
    return
  }
  func.func @transform_0(%arg0: i32, %arg1: i32) -> (i32, i32, i32, i32) {
    %c0_i32 = arith.constant 0 : i32
    %c0_i32_0 = arith.constant 0 : i32
    %c0_i32_1 = arith.constant 0 : i32
    %c0_i32_2 = arith.constant 0 : i32
    return %arg0, %c0_i32, %c0_i32_0, %c0_i32_1 : i32, i32, i32, i32
  }
  func.func @transform_1(%arg0: i32, %arg1: i32) -> (i32, i32, i32, i32) {
    %c0_i32 = arith.constant 0 : i32
    %c0_i32_0 = arith.constant 0 : i32
    %c0_i32_1 = arith.constant 0 : i32
    return %arg0, %c0_i32, %c0_i32_0, %arg1 : i32, i32, i32, i32
  }
  func.func @transform_2(%arg0: i32, %arg1: i32) -> (i32, i32, i32) {
    %c0_i32 = arith.constant 0 : i32
    %c0_i32_0 = arith.constant 0 : i32
    %c0_i32_1 = arith.constant 0 : i32
    %c0_i32_2 = arith.constant 0 : i32
    return %c0_i32, %c0_i32_0, %c0_i32_1 : i32, i32, i32
  }
  func.func @transform_3(%arg0: i32, %arg1: i32) -> (i32, i32, i32) {
    %c0_i32 = arith.constant 0 : i32
    %c0_i32_0 = arith.constant 0 : i32
    return %arg0, %c0_i32, %arg1 : i32, i32, i32
  }
  func.func @transform_4(%arg0: i32, %arg1: i32) -> (i32, i32, i32) {
    %c0_i32 = arith.constant 0 : i32
    %c0_i32_0 = arith.constant 0 : i32
    return %arg0, %c0_i32, %arg1 : i32, i32, i32
  }
}

module attributes {stable_mosaic.version = 11 : i64} {
  func.func @_attn_softmax_kernel(%arg0: i32, %arg1: i32, %arg2: i32, %arg3: memref<1x1x2x256xf32, #tpu.memory_space<vmem>>, %arg4: memref<1x1x2x256xf32, #tpu.memory_space<vmem>>, %arg5: memref<1x1x1xf32, #tpu.memory_space<vmem>>, %arg6: memref<1x1x2x2xf32, #tpu.memory_space<vmem>>, %arg7: memref<2x2xf32, #tpu.memory_space<vmem>>, %arg8: memref<2x1xf32, #tpu.memory_space<vmem>>, %arg9: memref<2x1xf32, #tpu.memory_space<vmem>>) attributes {dimension_semantics = [#tpu.dimension_semantics<parallel>, #tpu.dimension_semantics<parallel>, #tpu.dimension_semantics<arbitrary>], iteration_bounds = array<i64: 2, 2, 1>, scalar_prefetch = 0 : i64, scratch_operands = 3 : i64, tpu.core_type = #tpu.core_type<tc>, window_params = [{transform_indices = @transform_0, window_bounds = array<i64: 1, 1, 2, 256>}, {transform_indices = @transform_1, window_bounds = array<i64: 1, 1, 2, 256>}, {transform_indices = @transform_2, window_bounds = array<i64: 1, 1, 1>}, {transform_indices = @transform_3, window_bounds = array<i64: 1, 1, 2, 2>}]} {
    %c0_i32 = arith.constant 0 : i32
    %0 = arith.cmpi eq, %arg2, %c0_i32 : i32
    %1 = arith.extui %0 : i1 to i32
    %c0_i32_0 = arith.constant 0 : i32
    %2 = arith.cmpi ne, %1, %c0_i32_0 : i32
    scf.if %2 {
      %cst_24 = arith.constant 0.000000e+00 : f32
      %26 = vector.broadcast %cst_24 : f32 to vector<2x2xf32>
      %c0_25 = arith.constant 0 : index
      %c0_26 = arith.constant 0 : index
      %27 = vector.load %arg7[%c0_25, %c0_26] : memref<2x2xf32, #tpu.memory_space<vmem>>, vector<2x2xf32>
      tpu.vector_store %arg7[%c0_25, %c0_26], %26 {strides = array<i32>} : memref<2x2xf32, #tpu.memory_space<vmem>>, vector<2x2xf32>,
      %cst_27 = arith.constant 0.000000e+00 : f32
      %28 = vector.broadcast %cst_27 : f32 to vector<2x1xf32>
      %c0_28 = arith.constant 0 : index
      %c0_29 = arith.constant 0 : index
      %29 = vector.load %arg8[%c0_28, %c0_29] : memref<2x1xf32, #tpu.memory_space<vmem>>, vector<2x1xf32>
      tpu.vector_store %arg8[%c0_28, %c0_29], %28 {strides = array<i32>} : memref<2x1xf32, #tpu.memory_space<vmem>>, vector<2x1xf32>,
      %cst_30 = arith.constant 0.000000e+00 : f32
      %30 = vector.broadcast %cst_30 : f32 to vector<2x1xf32>
      %c0_31 = arith.constant 0 : index
      %c0_32 = arith.constant 0 : index
      %31 = vector.load %arg9[%c0_31, %c0_32] : memref<2x1xf32, #tpu.memory_space<vmem>>, vector<2x1xf32>
      tpu.vector_store %arg9[%c0_31, %c0_32], %30 {strides = array<i32>} : memref<2x1xf32, #tpu.memory_space<vmem>>, vector<2x1xf32>,
    } else {
    }
    %c0 = arith.constant 0 : index
    %c0_1 = arith.constant 0 : index
    %c0_2 = arith.constant 0 : index
    %c0_3 = arith.constant 0 : index
    %3 = vector.load %arg3[%c0, %c0_1, %c0_2, %c0_3] : memref<1x1x2x256xf32, #tpu.memory_space<vmem>>, vector<1x1x2x256xf32>
    %4 = vector.shape_cast %3 : vector<1x1x2x256xf32> to vector<2x256xf32>
    %c0_4 = arith.constant 0 : index
    %c0_5 = arith.constant 0 : index
    %c0_6 = arith.constant 0 : index
    %c0_7 = arith.constant 0 : index
    %5 = vector.load %arg4[%c0_4, %c0_5, %c0_6, %c0_7] : memref<1x1x2x256xf32, #tpu.memory_space<vmem>>, vector<1x1x2x256xf32>
    %6 = vector.shape_cast %5 : vector<1x1x2x256xf32> to vector<2x256xf32>
    %c0_8 = arith.constant 0 : index
    %c0_9 = arith.constant 0 : index
    %7 = vector.load %arg7[%c0_8, %c0_9] : memref<2x2xf32, #tpu.memory_space<vmem>>, vector<2x2xf32>
    %cst = arith.constant dense<0.000000e+00> : vector<2x2xf32>
    %8 = tpu.matmul %4, %6, %cst {dimension_numbers = #tpu.dot_dimension_numbers<[1], [1], [0], [0], [0, 0, 1, 0], [], []>} : vector<2x256xf32>, vector<2x256xf32>, vector<2x2xf32> -> vector<2x2xf32>
    %9 = arith.addf %7, %8 : vector<2x2xf32>
    %c0_10 = arith.constant 0 : index
    %c0_11 = arith.constant 0 : index
    %10 = vector.load %arg7[%c0_10, %c0_11] : memref<2x2xf32, #tpu.memory_space<vmem>>, vector<2x2xf32>
    tpu.vector_store %arg7[%c0_10, %c0_11], %9 {strides = array<i32>} : memref<2x2xf32, #tpu.memory_space<vmem>>, vector<2x2xf32>,
    %c0_12 = arith.constant 0 : index
    %c0_13 = arith.constant 0 : index
    %11 = vector.load %arg8[%c0_12, %c0_13] : memref<2x1xf32, #tpu.memory_space<vmem>>, vector<2x1xf32>
    %12 = arith.mulf %4, %4 : vector<2x256xf32>
    %cst_14 = arith.constant dense<0.000000e+00> : vector<2xf32>
    %13 = vector.multi_reduction <add>, %12, %cst_14 [1] : vector<2x256xf32> to vector<2xf32>
    %14 = vector.shape_cast %13 : vector<2xf32> to vector<2x1xf32>
    %15 = arith.addf %11, %14 : vector<2x1xf32>
    %c0_15 = arith.constant 0 : index
    %c0_16 = arith.constant 0 : index
    %16 = vector.load %arg8[%c0_15, %c0_16] : memref<2x1xf32, #tpu.memory_space<vmem>>, vector<2x1xf32>
    tpu.vector_store %arg8[%c0_15, %c0_16], %15 {strides = array<i32>} : memref<2x1xf32, #tpu.memory_space<vmem>>, vector<2x1xf32>,
    %c0_17 = arith.constant 0 : index
    %c0_18 = arith.constant 0 : index
    %17 = vector.load %arg9[%c0_17, %c0_18] : memref<2x1xf32, #tpu.memory_space<vmem>>, vector<2x1xf32>
    %18 = arith.mulf %6, %6 : vector<2x256xf32>
    %cst_19 = arith.constant dense<0.000000e+00> : vector<2xf32>
    %19 = vector.multi_reduction <add>, %18, %cst_19 [1] : vector<2x256xf32> to vector<2xf32>
    %20 = vector.shape_cast %19 : vector<2xf32> to vector<2x1xf32>
    %21 = arith.addf %17, %20 : vector<2x1xf32>
    %c0_20 = arith.constant 0 : index
    %c0_21 = arith.constant 0 : index
    %22 = vector.load %arg9[%c0_20, %c0_21] : memref<2x1xf32, #tpu.memory_space<vmem>>, vector<2x1xf32>
    tpu.vector_store %arg9[%c0_20, %c0_21], %21 {strides = array<i32>} : memref<2x1xf32, #tpu.memory_space<vmem>>, vector<2x1xf32>,
    %c0_i32_22 = arith.constant 0 : i32
    %23 = arith.cmpi eq, %arg2, %c0_i32_22 : i32
    %24 = arith.extui %23 : i1 to i32
    %c0_i32_23 = arith.constant 0 : i32
    %25 = arith.cmpi ne, %24, %c0_i32_23 : i32
    scf.if %25 {
      %c0_24 = arith.constant 0 : index
      %c0_25 = arith.constant 0 : index
      %c0_26 = arith.constant 0 : index
      %26 = vector.load %arg5[%c0_24, %c0_25, %c0_26] : memref<1x1x1xf32, #tpu.memory_space<vmem>>, vector<1x1x1xf32>
      %27 = vector.shape_cast %26 : vector<1x1x1xf32> to vector<1x1xf32>
      %c0_27 = arith.constant 0 : index
      %c0_28 = arith.constant 0 : index
      %28 = vector.load %arg8[%c0_27, %c0_28] : memref<2x1xf32, #tpu.memory_space<vmem>>, vector<2x1xf32>
      %cst_29 = arith.constant 1.000000e-24 : f32
      %29 = vector.broadcast %cst_29 : f32 to vector<2x1xf32>
      %30 = arith.maximumf %28, %29 : vector<2x1xf32>
      %31 = math.rsqrt %30 : vector<2x1xf32>
      %c0_30 = arith.constant 0 : index
      %c0_31 = arith.constant 0 : index
      %32 = vector.load %arg9[%c0_30, %c0_31] : memref<2x1xf32, #tpu.memory_space<vmem>>, vector<2x1xf32>
      %cst_32 = arith.constant 1.000000e-24 : f32
      %33 = vector.broadcast %cst_32 : f32 to vector<2x1xf32>
      %34 = arith.maximumf %32, %33 : vector<2x1xf32>
      %35 = math.rsqrt %34 : vector<2x1xf32>
      %c0_33 = arith.constant 0 : index
      %c0_34 = arith.constant 0 : index
      %36 = vector.load %arg7[%c0_33, %c0_34] : memref<2x2xf32, #tpu.memory_space<vmem>>, vector<2x2xf32>
      %37 = vector.broadcast %27 : vector<1x1xf32> to vector<2x1xf32>
      %38 = arith.mulf %31, %37 : vector<2x1xf32>
      %39 = vector.broadcast %38 : vector<2x1xf32> to vector<2x2xf32>
      %40 = arith.mulf %36, %39 : vector<2x2xf32>
      %41 = vector.shape_cast %35 : vector<2x1xf32> to vector<1x2xf32>
      %42 = vector.broadcast %41 : vector<1x2xf32> to vector<2x2xf32>
      %43 = arith.mulf %40, %42 : vector<2x2xf32>
      %cst_35 = arith.constant dense<0xFF800000> : vector<2xf32>
      %44 = vector.multi_reduction <maximumf>, %43, %cst_35 [1] : vector<2x2xf32> to vector<2xf32>
      %45 = vector.shape_cast %44 : vector<2xf32> to vector<2x1xf32>
      %46 = vector.broadcast %45 : vector<2x1xf32> to vector<2x2xf32>
      %47 = arith.subf %43, %46 : vector<2x2xf32>
      %48 = math.exp %47 : vector<2x2xf32>
      %cst_36 = arith.constant dense<0.000000e+00> : vector<2xf32>
      %49 = vector.multi_reduction <add>, %48, %cst_36 [1] : vector<2x2xf32> to vector<2xf32>
      %50 = vector.shape_cast %49 : vector<2xf32> to vector<2x1xf32>
      %51 = vector.broadcast %50 : vector<2x1xf32> to vector<2x2xf32>
      %52 = arith.divf %48, %51 : vector<2x2xf32>
      %c0_37 = arith.constant 0 : index
      %c0_38 = arith.constant 0 : index
      %c0_39 = arith.constant 0 : index
      %c0_40 = arith.constant 0 : index
      %53 = vector.load %arg6[%c0_37, %c0_38, %c0_39, %c0_40] : memref<1x1x2x2xf32, #tpu.memory_space<vmem>>, vector<1x1x2x2xf32>
      %54 = vector.shape_cast %53 : vector<1x1x2x2xf32> to vector<2x2xf32>
      %55 = vector.shape_cast %52 : vector<2x2xf32> to vector<1x1x2x2xf32>
      tpu.vector_store %arg6[%c0_37, %c0_38, %c0_39, %c0_40], %55 {strides = array<i32>} : memref<1x1x2x2xf32, #tpu.memory_space<vmem>>, vector<1x1x2x2xf32>,
    } else {
    }
    return
  }
  func.func @transform_0(%arg0: i32, %arg1: i32, %arg2: i32) -> (i32, i32, i32, i32) {
    %c0_i32 = arith.constant 0 : i32
    %c0_i32_0 = arith.constant 0 : i32
    return %arg0, %arg1, %c0_i32, %arg2 : i32, i32, i32, i32
  }
  func.func @transform_1(%arg0: i32, %arg1: i32, %arg2: i32) -> (i32, i32, i32, i32) {
    %c0_i32 = arith.constant 0 : i32
    %c0_i32_0 = arith.constant 0 : i32
    return %arg0, %arg1, %c0_i32, %arg2 : i32, i32, i32, i32
  }
  func.func @transform_2(%arg0: i32, %arg1: i32, %arg2: i32) -> (i32, i32, i32) {
    %c0_i32 = arith.constant 0 : i32
    %c0_i32_0 = arith.constant 0 : i32
    %c0_i32_1 = arith.constant 0 : i32
    return %arg1, %c0_i32, %c0_i32_0 : i32, i32, i32
  }
  func.func @transform_3(%arg0: i32, %arg1: i32, %arg2: i32) -> (i32, i32, i32, i32) {
    %c0_i32 = arith.constant 0 : i32
    %c0_i32_0 = arith.constant 0 : i32
    %c0_i32_1 = arith.constant 0 : i32
    return %arg0, %arg1, %c0_i32, %c0_i32_0 : i32, i32, i32, i32
  }
}

module attributes {stable_mosaic.version = 11 : i64} {
  func.func @_pointwise_kernel(%arg0: i32, %arg1: i32, %arg2: memref<1x4x256xf32, #tpu.memory_space<vmem>>, %arg3: memref<8x4xf32, #tpu.memory_space<vmem>>, %arg4: memref<8x1xf32, #tpu.memory_space<vmem>>, %arg5: memref<1x8x256xf32, #tpu.memory_space<vmem>>) attributes {dimension_semantics = [#tpu.dimension_semantics<parallel>, #tpu.dimension_semantics<parallel>], iteration_bounds = array<i64: 2, 1>, scalar_prefetch = 0 : i64, scratch_operands = 0 : i64, tpu.core_type = #tpu.core_type<tc>, window_params = [{transform_indices = @transform_0, window_bounds = array<i64: 1, 4, 256>}, {pipeline_mode = #tpu.pipeline_mode<synchronous>, transform_indices = @transform_1, window_bounds = array<i64: 8, 4>}, {pipeline_mode = #tpu.pipeline_mode<synchronous>, transform_indices = @transform_2, window_bounds = array<i64: 8, 1>}, {transform_indices = @transform_3, window_bounds = array<i64: 1, 8, 256>}]} {
    %c0 = arith.constant 0 : index
    %c0_0 = arith.constant 0 : index
    %c0_1 = arith.constant 0 : index
    %0 = vector.load %arg2[%c0, %c0_0, %c0_1] : memref<1x4x256xf32, #tpu.memory_space<vmem>>, vector<1x4x256xf32>
    %1 = vector.shape_cast %0 : vector<1x4x256xf32> to vector<4x256xf32>
    %c0_2 = arith.constant 0 : index
    %c0_3 = arith.constant 0 : index
    %2 = vector.load %arg3[%c0_2, %c0_3] : memref<8x4xf32, #tpu.memory_space<vmem>>, vector<8x4xf32>
    %cst = arith.constant dense<0.000000e+00> : vector<8x256xf32>
    %3 = tpu.matmul %2, %1, %cst {dimension_numbers = #tpu.dot_dimension_numbers<[1], [0], [0], [1], [0, 0, 1, 1], [], []>} : vector<8x4xf32>, vector<4x256xf32>, vector<8x256xf32> -> vector<8x256xf32>
    %c0_4 = arith.constant 0 : index
    %c0_5 = arith.constant 0 : index
    %4 = vector.load %arg4[%c0_4, %c0_5] : memref<8x1xf32, #tpu.memory_space<vmem>>, vector<8x1xf32>
    %5 = vector.broadcast %4 : vector<8x1xf32> to vector<8x256xf32>
    %6 = arith.addf %3, %5 : vector<8x256xf32>
    %cst_6 = arith.constant 5.000000e-01 : f32
    %7 = vector.broadcast %cst_6 : f32 to vector<8x256xf32>
    %8 = arith.mulf %7, %6 : vector<8x256xf32>
    %cst_7 = arith.constant 0.707106769 : f32
    %9 = vector.broadcast %cst_7 : f32 to vector<8x256xf32>
    %10 = arith.mulf %6, %9 : vector<8x256xf32>
    %11 = math.absf %10 : vector<8x256xf32>
    %cst_8 = arith.constant 0.327591091 : f32
    %12 = vector.broadcast %cst_8 : f32 to vector<8x256xf32>
    %13 = arith.mulf %12, %11 : vector<8x256xf32>
    %cst_9 = arith.constant 1.000000e+00 : f32
    %14 = vector.broadcast %cst_9 : f32 to vector<8x256xf32>
    %15 = arith.addf %14, %13 : vector<8x256xf32>
    %cst_10 = arith.constant 1.000000e+00 : f32
    %16 = vector.broadcast %cst_10 : f32 to vector<8x256xf32>
    %17 = arith.divf %16, %15 : vector<8x256xf32>
    %cst_11 = arith.constant 1.06140542 : f32
    %18 = vector.broadcast %cst_11 : f32 to vector<8x256xf32>
    %19 = arith.mulf %18, %17 : vector<8x256xf32>
    %cst_12 = arith.constant -1.45315206 : f32
    %20 = vector.broadcast %cst_12 : f32 to vector<8x256xf32>
    %21 = arith.addf %19, %20 : vector<8x256xf32>
    %22 = arith.mulf %21, %17 : vector<8x256xf32>
    %cst_13 = arith.constant 1.42141378 : f32
    %23 = vector.broadcast %cst_13 : f32 to vector<8x256xf32>
    %24 = arith.addf %22, %23 : vector<8x256xf32>
    %25 = arith.mulf %24, %17 : vector<8x256xf32>
    %cst_14 = arith.constant -0.284496725 : f32
    %26 = vector.broadcast %cst_14 : f32 to vector<8x256xf32>
    %27 = arith.addf %25, %26 : vector<8x256xf32>
    %28 = arith.mulf %27, %17 : vector<8x256xf32>
    %cst_15 = arith.constant 0.254829586 : f32
    %29 = vector.broadcast %cst_15 : f32 to vector<8x256xf32>
    %30 = arith.addf %28, %29 : vector<8x256xf32>
    %31 = arith.mulf %30, %17 : vector<8x256xf32>
    %cst_16 = arith.constant 0.000000e+00 : f32
    %32 = vector.broadcast %cst_16 : f32 to vector<8x256xf32>
    %33 = arith.subf %32, %11 : vector<8x256xf32>
    %34 = arith.mulf %33, %11 : vector<8x256xf32>
    %35 = math.exp %34 : vector<8x256xf32>
    %36 = arith.mulf %31, %35 : vector<8x256xf32>
    %cst_17 = arith.constant 1.000000e+00 : f32
    %37 = vector.broadcast %cst_17 : f32 to vector<8x256xf32>
    %38 = arith.subf %37, %36 : vector<8x256xf32>
    %cst_18 = arith.constant 0.000000e+00 : f32
    %39 = vector.broadcast %cst_18 : f32 to vector<8x256xf32>
    %40 = arith.cmpf olt, %10, %39 : vector<8x256xf32>
    %cst_19 = arith.constant 0.000000e+00 : f32
    %41 = vector.broadcast %cst_19 : f32 to vector<8x256xf32>
    %42 = arith.subf %41, %38 : vector<8x256xf32>
    %43 = arith.select %40, %42, %38 : vector<8x256xi1>, vector<8x256xf32>
    %cst_20 = arith.constant 1.000000e+00 : f32
    %44 = vector.broadcast %cst_20 : f32 to vector<8x256xf32>
    %45 = arith.addf %44, %43 : vector<8x256xf32>
    %46 = arith.mulf %8, %45 : vector<8x256xf32>
    %c0_21 = arith.constant 0 : index
    %c0_22 = arith.constant 0 : index
    %c0_23 = arith.constant 0 : index
    %47 = vector.load %arg5[%c0_21, %c0_22, %c0_23] : memref<1x8x256xf32, #tpu.memory_space<vmem>>, vector<1x8x256xf32>
    %48 = vector.shape_cast %47 : vector<1x8x256xf32> to vector<8x256xf32>
    %49 = vector.shape_cast %46 : vector<8x256xf32> to vector<1x8x256xf32>
    tpu.vector_store %arg5[%c0_21, %c0_22, %c0_23], %49 {strides = array<i32>} : memref<1x8x256xf32, #tpu.memory_space<vmem>>, vector<1x8x256xf32>,
    return
  }
  func.func @transform_0(%arg0: i32, %arg1: i32) -> (i32, i32, i32) {
    %c0_i32 = arith.constant 0 : i32
    %c0_i32_0 = arith.constant 0 : i32
    return %arg0, %c0_i32, %arg1 : i32, i32, i32
  }
  func.func @transform_1(%arg0: i32, %arg1: i32) -> (i32, i32) {
    %c0_i32 = arith.constant 0 : i32
    %c0_i32_0 = arith.constant 0 : i32
    %c0_i32_1 = arith.constant 0 : i32
    return %c0_i32, %c0_i32_0 : i32, i32
  }
  func.func @transform_2(%arg0: i32, %arg1: i32) -> (i32, i32) {
    %c0_i32 = arith.constant 0 : i32
    %c0_i32_0 = arith.constant 0 : i32
    %c0_i32_1 = arith.constant 0 : i32
    return %c0_i32, %c0_i32_0 : i32, i32
  }
  func.func @transform_3(%arg0: i32, %arg1: i32) -> (i32, i32, i32) {
    %c0_i32 = arith.constant 0 : i32
    %c0_i32_0 = arith.constant 0 : i32
    return %arg0, %c0_i32, %arg1 : i32, i32, i32
  }
}

module attributes {stable_mosaic.version = 11 : i64} {
  func.func @_pointwise_kernel(%arg0: i32, %arg1: i32, %arg2: memref<1x8x256xf32, #tpu.memory_space<vmem>>, %arg3: memref<4x8xf32, #tpu.memory_space<vmem>>, %arg4: memref<4x1xf32, #tpu.memory_space<vmem>>, %arg5: memref<1x4x256xf32, #tpu.memory_space<vmem>>, %arg6: memref<1x4x256xf32, #tpu.memory_space<vmem>>) attributes {dimension_semantics = [#tpu.dimension_semantics<parallel>, #tpu.dimension_semantics<parallel>], iteration_bounds = array<i64: 2, 1>, scalar_prefetch = 0 : i64, scratch_operands = 0 : i64, tpu.core_type = #tpu.core_type<tc>, window_params = [{transform_indices = @transform_0, window_bounds = array<i64: 1, 8, 256>}, {pipeline_mode = #tpu.pipeline_mode<synchronous>, transform_indices = @transform_1, window_bounds = array<i64: 4, 8>}, {pipeline_mode = #tpu.pipeline_mode<synchronous>, transform_indices = @transform_2, window_bounds = array<i64: 4, 1>}, {transform_indices = @transform_3, window_bounds = array<i64: 1, 4, 256>}, {transform_indices = @transform_4, window_bounds = array<i64: 1, 4, 256>}]} {
    %c0 = arith.constant 0 : index
    %c0_0 = arith.constant 0 : index
    %c0_1 = arith.constant 0 : index
    %0 = vector.load %arg2[%c0, %c0_0, %c0_1] : memref<1x8x256xf32, #tpu.memory_space<vmem>>, vector<1x8x256xf32>
    %1 = vector.shape_cast %0 : vector<1x8x256xf32> to vector<8x256xf32>
    %c0_2 = arith.constant 0 : index
    %c0_3 = arith.constant 0 : index
    %2 = vector.load %arg3[%c0_2, %c0_3] : memref<4x8xf32, #tpu.memory_space<vmem>>, vector<4x8xf32>
    %cst = arith.constant dense<0.000000e+00> : vector<4x256xf32>
    %3 = tpu.matmul %2, %1, %cst {dimension_numbers = #tpu.dot_dimension_numbers<[1], [0], [0], [1], [0, 0, 1, 1], [], []>} : vector<4x8xf32>, vector<8x256xf32>, vector<4x256xf32> -> vector<4x256xf32>
    %c0_4 = arith.constant 0 : index
    %c0_5 = arith.constant 0 : index
    %4 = vector.load %arg4[%c0_4, %c0_5] : memref<4x1xf32, #tpu.memory_space<vmem>>, vector<4x1xf32>
    %5 = vector.broadcast %4 : vector<4x1xf32> to vector<4x256xf32>
    %6 = arith.addf %3, %5 : vector<4x256xf32>
    %c0_6 = arith.constant 0 : index
    %c0_7 = arith.constant 0 : index
    %c0_8 = arith.constant 0 : index
    %7 = vector.load %arg5[%c0_6, %c0_7, %c0_8] : memref<1x4x256xf32, #tpu.memory_space<vmem>>, vector<1x4x256xf32>
    %8 = vector.shape_cast %7 : vector<1x4x256xf32> to vector<4x256xf32>
    %9 = arith.addf %6, %8 : vector<4x256xf32>
    %c0_9 = arith.constant 0 : index
    %c0_10 = arith.constant 0 : index
    %c0_11 = arith.constant 0 : index
    %10 = vector.load %arg6[%c0_9, %c0_10, %c0_11] : memref<1x4x256xf32, #tpu.memory_space<vmem>>, vector<1x4x256xf32>
    %11 = vector.shape_cast %10 : vector<1x4x256xf32> to vector<4x256xf32>
    %12 = vector.shape_cast %9 : vector<4x256xf32> to vector<1x4x256xf32>
    tpu.vector_store %arg6[%c0_9, %c0_10, %c0_11], %12 {strides = array<i32>} : memref<1x4x256xf32, #tpu.memory_space<vmem>>, vector<1x4x256xf32>,
    return
  }
  func.func @transform_0(%arg0: i32, %arg1: i32) -> (i32, i32, i32) {
    %c0_i32 = arith.constant 0 : i32
    %c0_i32_0 = arith.constant 0 : i32
    return %arg0, %c0_i32, %arg1 : i32, i32, i32
  }
  func.func @transform_1(%arg0: i32, %arg1: i32) -> (i32, i32) {
    %c0_i32 = arith.constant 0 : i32
    %c0_i32_0 = arith.constant 0 : i32
    %c0_i32_1 = arith.constant 0 : i32
    return %c0_i32, %c0_i32_0 : i32, i32
  }
  func.func @transform_2(%arg0: i32, %arg1: i32) -> (i32, i32) {
    %c0_i32 = arith.constant 0 : i32
    %c0_i32_0 = arith.constant 0 : i32
    %c0_i32_1 = arith.constant 0 : i32
    return %c0_i32, %c0_i32_0 : i32, i32
  }
  func.func @transform_3(%arg0: i32, %arg1: i32) -> (i32, i32, i32) {
    %c0_i32 = arith.constant 0 : i32
    %c0_i32_0 = arith.constant 0 : i32
    return %arg0, %c0_i32, %arg1 : i32, i32, i32
  }
  func.func @transform_4(%arg0: i32, %arg1: i32) -> (i32, i32, i32) {
    %c0_i32 = arith.constant 0 : i32
    %c0_i32_0 = arith.constant 0 : i32
    return %arg0, %c0_i32, %arg1 : i32, i32, i32
  }
}

</mosaic_0001>

<bundles_post_ra>
// kernel: fica_forward.13
= control target key start
LH: loop header
LB: loop body
LE: loop exit
PB: predicated region body
PF: predicated region fallthrough
CT: control target
= control target key end

     0   :  { %s471_s12 = smov 0   ;;  %s473_s13 = smov 0   ;;  %s517_s0 = inlined_call_operand.vmem [shape: f32[2,4,256], index: 0, kind: input, shape index: {}]   ;;  %s518_s1 = inlined_call_operand.vmem [shape: f32[4,1], index: 1, kind: input, shape index: {}]   ;;  %s519_s2 = inlined_call_operand.vmem [shape: f32[4,1], index: 2, kind: input, shape index: {}]   ;;  %s520_s3 = inlined_call_operand.vmem [shape: f32[2,4,256], index: 3, kind: output, shape index: {}]  }
   0x1   :  { %s475_s14 = smov 0  }
   0x2 LB: > { %s25_s15 = sadd.s32 1, %s444_s13  ;;  %p386_p0 = scmp.ge.s32.totalorder %s448_s14, 1  ;;  %s448_s14 = sphi %s475_s14, %s13_s14   ;;  %s444_s13 = sphi %s473_s13, %s522_s13   ;;  %s440_s12 = sphi %s471_s12, %s521_s12  }
   0x3   : > { %p27_p1 = scmp.ge.s32.totalorder %s25_s15, 2  ;;  %p158_p2 = scmp.lt.s32.totalorder %s448_s14, 3 }
   0x5   : > { %s524_s15 = smov (%p27_p1, %s25_s15), 0  ;;  %p159_p3 = pnand %p386_p0, %p158_p2 }
   0x6   : > { %p191_p4 = scmp.lt.s32.totalorder (!%p159_p3), %s440_s12, 1 }
   0x7   : > { %162 = sbr.rel (%p159_p3) target bundleno = 147 (0x93), region = 32 }
   0xc   : > { %v271_v0 = vld [vmem:[%s518_s1] sm:$0xf]  ;;  %v450_v1 = vmov 0   ;;  %s526_s12 = smov (!%p191_p4, %s440_s12), 1  ;;  %vm214_vm0 = vcmask 1043456  }
   0xd   : > { %420 = vset.pattern.permute.xlu0 %v450_v1  ;;  %v272_v2 = vld [vmem:[%s519_s2] sm:$0xf]  ;;  %s393_s20 = sshll.u32 %s526_s12, 3 }
   0xe   : > { %275 = vperm.xlu0 %420, %v271_v0   ;;  %s198_s23 = scalar_lea.vmem %s517_s0, %s393_s20  ;;  %s208_s26 = scalar_lea.vmem %s520_s3, %s393_s20 }
   0xf   : > { %v210_v3 = vld [vmem:[%s198_s23] sm:$0xff] }
  0x10   : > { %v212_v4 = vcombine.high %v210_v3, %v210_v3  ;;  %v231_v5 = vmul.f32 %v210_v3, %v210_v3  ;;  %v215_v6 = vsel %vm214_vm0, %v210_v3, 0.0 }
  0x11   : > { %v216_v9 = vrot.slane %v215_v6, 4 }
  0x12   : > { %285 = vperm.xlu0 %420, %v272_v2   ;;  %v222_v7 = vsel %vm214_vm0, %v212_v4, 0.0  ;;  %v233_v8 = vcombine.high %v231_v5, %v231_v5  ;;  %v235_v11 = vsel %vm214_vm0, %v231_v5, 0.0 }
  0x13   : > { %v223_v10 = vrot.slane %v222_v7, 4  ;;  %v217_v13 = vadd.f32 %v216_v9, %v215_v6  ;;  %v236_v14 = vrot.slane %v235_v11, 4 }
  0x14   : > { %v242_v12 = vsel %vm214_vm0, %v233_v8, 0.0 }
  0x15   : > { %v224_v15 = vadd.f32 %v223_v10, %v222_v7  ;;  %v243_v16 = vrot.slane %v242_v12, 4  ;;  %v218_v17 = vrot.slane %v217_v13, 2  ;;  %v237_v18 = vadd.f32 %v236_v14, %v235_v11 }
  0x17   : > { %v225_v19 = vrot.slane %v224_v15, 2  ;;  %v244_v20 = vadd.f32 %v243_v16, %v242_v12  ;;  %v219_v21 = vadd.f32 %v218_v17, %v217_v13  ;;  %v238_v22 = vrot.slane %v237_v18, 2 }
  0x19   : > { %v226_v23 = vadd.f32 %v225_v19, %v224_v15  ;;  %v245_v24 = vrot.slane %v244_v20, 2  ;;  %v220_v25 = vrot.slane %v219_v21, 1  ;;  %v239_v26 = vadd.f32 %v238_v22, %v237_v18 }
  0x1b   : > { %v227_v27 = vrot.slane %v226_v23, 1  ;;  %v246_v28 = vadd.f32 %v245_v24, %v244_v20  ;;  %v221_v29 = vadd.f32 %v220_v25, %v219_v21  ;;  %v240_v30 = vrot.slane %v239_v26, 1 }
  0x1d   : > { %v228_v31 = vadd.f32 %v227_v27, %v226_v23  ;;  %v247_v32 = vrot.slane %v246_v28, 1  ;;  %v229_v33 = vmul.f32 0.25, %v221_v29  ;;  %v241_v34 = vadd.f32 %v240_v30, %v239_v26 }
  0x1f   : > { %v230_v35 = vmul.f32 0.25, %v228_v31  ;;  %v248_v36 = vadd.f32 %v247_v32, %v246_v28  ;;  %v249_v37 = vmul.f32 0.25, %v241_v34  ;;  %v251_v38 = vmul.f32 %v229_v33, %v229_v33 }
  0x21   : > { %v250_v39 = vmul.f32 0.25, %v248_v36  ;;  %v252_v40 = vmul.f32 %v230_v35, %v230_v35  ;;  %v253_v41 = vsub.f32 %v249_v37, %v251_v38  ;;  %v259_v48 = vcombine.low %v229_v33, %v230_v35 }
  0x23   : > { %v254_v42 = vsub.f32 %v250_v39, %v252_v40  ;;  %v255_v43 = vmax.f32 %v253_v41, 0.0  ;;  %v261_v50 = vsub.f32 %v210_v3, %v259_v48 }
  0x25   : > { %v256_v44 = vmax.f32 %v254_v42, 0.0  ;;  %v262_v45 = vadd.f32 1e-05, %v255_v43 }
  0x27   : > { %v263_v46 = vadd.f32 1e-05, %v256_v44  ;;  %422 = vrsqrt.f32 %v262_v45 }
  0x29   : > { %424 = vrsqrt.f32 %v263_v46 }
  0x34   : > { %v423_v47 = vpop.eup %422 }
  0x36   : > { %v425_v49 = vpop.eup %424 }
  0x37   : > { %v268_v51 = vcombine.low %v423_v47, %v425_v49 }
  0x39   : > { %v270_v52 = vmul.f32 %v268_v51, %v261_v50 }
  0x3b   : > { %v279_v53 = vcombine.high %v270_v52, %v270_v52 }
  0x89   : > { %v276_v54 = vpop.permute.xlu0 %275 }
  0x8a   : > { %v281_v55 = vmul.f32 %v276_v54, %v270_v52  ;;  %v282_v56 = vmul.f32 %v279_v53, %v276_v54 }
  0x8d   : > { %v286_v57 = vpop.permute.xlu0 %285 }
  0x8e   : > { %v288_v58 = vadd.f32 %v286_v57, %v281_v55  ;;  %v289_v59 = vadd.f32 %v286_v57, %v282_v56 }
  0x90   : > { %v292_v60 = vcombine.low %v288_v58, %v289_v59 }
  0x92   : > { %294 = vst [vmem:[%s208_s26] sm:$0xff] %v292_v60 }
  0x93 PF: > { %s13_s14 = sadd.s32 1, %s448_s14   ;;  %s521_s12 = smov %s444_s13 }
  0x94   : > { %p10_p5 = scmp.ge.s32.totalorder %s13_s14, 4   ;;  %s522_s13 = smov %s524_s15 }
  0x96   :  { %12 = sbr.rel (!%p10_p5) target bundleno = 2 (0x2), region = 62 }

// kernel: fica_forward.15
= control target key start
LH: loop header
LB: loop body
LE: loop exit
PB: predicated region body
PF: predicated region fallthrough
CT: control target
= control target key end

     0   :  { %s482_s12 = smov 0   ;;  %s484_s13 = smov 0   ;;  %s521_s0 = inlined_call_operand.vmem [shape: f32[2,4,256], index: 0, kind: input, shape index: {}]   ;;  %s522_s1 = inlined_call_operand.vmem [shape: f32[4,4], index: 1, kind: input, shape index: {}]   ;;  %s523_s2 = inlined_call_operand.vmem [shape: f32[4,1], index: 2, kind: input, shape index: {}]   ;;  %s524_s3 = inlined_call_operand.vmem [shape: f32[2,4,256], index: 3, kind: output, shape index: {}]  }
   0x1   :  { %s486_s14 = smov 0  }
   0x2 LB: > { %s25_s15 = sadd.s32 1, %s454_s13  ;;  %p396_p0 = scmp.ge.s32.totalorder %s458_s14, 1  ;;  %s458_s14 = sphi %s486_s14, %s13_s14   ;;  %s454_s13 = sphi %s484_s13, %s526_s13   ;;  %s450_s12 = sphi %s482_s12, %s525_s12  }
   0x3   : > { %p27_p1 = scmp.ge.s32.totalorder %s25_s15, 2  ;;  %p158_p2 = scmp.lt.s32.totalorder %s458_s14, 3 }
   0x5   : > { %s528_s15 = smov (%p27_p1, %s25_s15), 0  ;;  %p159_p3 = pnand %p396_p0, %p158_p2 }
   0x6   : > { %p191_p4 = scmp.lt.s32.totalorder (!%p159_p3), %s450_s12, 1 }
   0x7   : > { %162 = sbr.rel (%p159_p3) target bundleno = 220 (0xdc), region = 32 }
   0xc   : > { %v460_v0 = vmov 0.0   ;;  %v212_v1 = vld [vmem:[%s523_s2] sm:$0xf]  ;;  %s530_s12 = smov (!%p191_p4, %s450_s12), 1  ;;  %v461_v2 = vmov 0   ;;  %vm224_vm0 = vcmask 1043456  }
   0xd   : > { %293 = vmatprep.mubr.f32.mxu0 %v460_v0  ;;  %434 = vset.pattern.permute.xlu0 %v461_v2  ;;  %s406_s18 = sshll.u32 %s530_s12, 3  ;;  %v211_v5 = vld [vmem:[%s522_s1] sm:$0xf]  ;;  %vm220_vm1 = vcmask 31744  }
   0xe   : > { %215 = vperm.xlu0 %434, %v212_v1   ;;  %s198_s21 = scalar_lea.vmem %s521_s0, %s406_s18  ;;  %s208_s26 = scalar_lea.vmem %s524_s3, %s406_s18 }
   0xf   : > { %v210_v3 = vld [vmem:[%s198_s21] sm:$0xff] }
  0x10   : > { %v219_v4 = vcombine.high %v210_v3, %v210_v3 }
  0x12   : > { %401 = vmatprep.subr.msk.mxu0 %vm224_vm0, %v219_v4 }
  0x13   : > { %402 = vmatpush1.msk.msra.mxu0 %vm224_vm0, %v210_v3 }
  0x14   : > { %403 = vmatmul.mubr.msk.f32.vlgmr.msra.gmra.mxu0 %vm220_vm1, %v211_v5 }
  0x89   : > { %v216_v6 = vpop.permute.xlu0 %215 }
  0xd4   : > { %v295_v7 = vpop.f32.mrf.mxu0 }
  0xd5   : > { %v296_v9 = vadd.f32 %v295_v7, %v216_v6 }
  0xd6   : > { %v297_v8 = vpop.f32.mrf.mxu0 }
  0xd7   : > { %v298_v10 = vadd.f32 %v297_v8, %v216_v6 }
  0xd9   : > { %v302_v11 = vcombine.low %v296_v9, %v298_v10 }
  0xdb   : > { %304 = vst [vmem:[%s208_s26] sm:$0xff] %v302_v11 }
  0xdc PF: > { %s13_s14 = sadd.s32 1, %s458_s14   ;;  %s525_s12 = smov %s454_s13 }
  0xdd   : > { %p10_p5 = scmp.ge.s32.totalorder %s13_s14, 4   ;;  %s526_s13 = smov %s528_s15 }
  0xdf   :  { %12 = sbr.rel (!%p10_p5) target bundleno = 2 (0x2), region = 62 }

// kernel: fica_forward.16
= control target key start
LH: loop header
LB: loop body
LE: loop exit
PB: predicated region body
PF: predicated region fallthrough
CT: control target
= control target key end

     0   :  { %s1342_s12 = smov 0   ;;  %s1344_s13 = smov 0   ;;  %s1911_s0 = inlined_call_operand.vmem [shape: f32[2,4,18,18], index: 0, kind: input, shape index: {}]   ;;  %s1912_s1 = inlined_call_operand.vmem [shape: f32[4,3,3], index: 1, kind: input, shape index: {}]   ;;  %s1913_s2 = inlined_call_operand.vmem [shape: f32[4,1], index: 2, kind: input, shape index: {}]   ;;  %s1914_s3 = inlined_call_operand.vmem [shape: f32[2,4,16,16], index: 3, kind: output, shape index: {}]  }
   0x1   :  { %s1346_s14 = smov 0  }
   0x2 LB: > { %s25_s15 = sadd.s32 1, %s1312_s13  ;;  %p1183_p0 = scmp.ge.s32.totalorder %s1316_s14, 1  ;;  %s1316_s14 = sphi %s1346_s14, %s13_s14   ;;  %s1312_s13 = sphi %s1344_s13, %s1929_s13   ;;  %s1308_s12 = sphi %s1342_s12, %s1928_s12  }
   0x3   : > { %p27_p1 = scmp.ge.s32.totalorder %s25_s15, 2  ;;  %p179_p2 = scmp.lt.s32.totalorder %s1316_s14, 3 }
   0x5   : > { %s1931_s15 = smov (%p27_p1, %s25_s15), 0  ;;  %p180_p3 = pnand %p1183_p0, %p179_p2 }
   0x6   : > { %s1318_s18 = smov (!%p180_p3), 127   ;;  %s1320_s25 = smov (!%p180_p3), 126  }
   0x7   : > { %183 = sbr.rel (%p180_p3) target bundleno = 393 (0x189), region = 32  ;;  %p223_p4 = scmp.lt.s32.totalorder (!%p180_p3), %s1308_s12, 1 }
   0xc   : > { %v266_v0 = vld [vmem:[%s1912_s1] sm:$0x7]  ;;  %v267_v1 = vld [vmem:[%s1912_s1 + $0x4] sm:$0x7]  ;;  %v268_v2 = vld [vmem:[%s1912_s1 + $0x8] sm:$0x7]  ;;  %v989_v12 = vlaneseq }
   0xd   : > { %302 = vrot.lane.b32.xlu0 %v266_v0, %s1318_s18  ;;  %1192 = vpush %v266_v0  ;;  %306 = vrot.lane.b32.xlu1 %v268_v2, %s1318_s18  ;;  %v269_v3 = vld [vmem:[%s1912_s1 + $0xc] sm:$0x7]  ;;  %v1319_v4 = vmov 0   ;;  %v438_v5 = vrot.slane %v266_v0, 1  ;;  %v439_v6 = vrot.slane %v267_v1, 1  ;;  %v440_v7 = vrot.slane %v268_v2, 1 }
   0xe   : > { %1194 = vpush %v267_v1  ;;  %1293 = vset.pattern.permute.xlu1 %v1319_v4  ;;  %1292 = vset.pattern.permute.xlu0 %v1319_v4  ;;  %v441_v8 = vrot.slane %v269_v3, 1  ;;  %v1389_v9 = vrot.slane %v266_v0, 2  ;;  %v1321_v10 = vmov 1966171168   ;;  %v1392_v13 = vrot.slane %v267_v1, 2  ;;  %s1933_s12 = smov (!%p223_p4, %s1308_s12), 1 }
   0xf   : > { %1196 = vpush %v268_v2  ;;  %v987_v11 = vunpack.c.l.s4 %v1321_v10  ;;  %v1396_v14 = vrot.slane %v268_v2, 2  ;;  %v990_v16 = vshrl.u32 %v989_v12, 7  ;;  %v1400_v17 = vrot.slane %v269_v3, 2  ;;  %s1191_s28 = smul.u32 96, %s1933_s12 }
  0x10   : > { %1198 = vpush %v269_v3  ;;  %v1187_v18 = vld.sshfl [vmem:[%s1913_s2] sm:$0x33 pattern:$0x75316420]  ;;  %vm478_vm0 = vcmask 1046528   ;;  %vm747_vm1 = vcmask 1045504  }
  0x11   : > { %304 = vrot.lane.b32.xlu0 %v267_v1, %s1318_s18  ;;  %308 = vrot.lane.b32.xlu1 %v269_v3, %s1318_s18  ;;  %v988_v15 = vunpack.c.0.s8 %v987_v11  ;;  %v985_v20 = vcombine.high %v1187_v18, %v1187_v18  ;;  %v1004_v21 = vsub.s32 0, %v990_v16  ;;  %s1433_s6 = scalar_lea.vmem %s1911_s0, %s1191_s28  ;;  %vm1042_vm2 = vcmask 130048  }
  0x12   : > { %v1440_v54 = vld [vmem:[%s1433_s6] sm:$0xff]  ;;  %v1443_v55 = vld [vmem:[%s1433_s6 + $0x8] sm:$0xff]  ;;  %v1450_v59 = vld [vmem:[%s1433_s6 + $0x18] sm:$0xff] }
  0x13   : > { %v991_v19 = vsub.s32 %v988_v15, %v990_v16  ;;  %v1453_v60 = vld [vmem:[%s1433_s6 + $0x20] sm:$0xff]  ;;  %v1482_v11 = vld [vmem:[%s1433_s6 + $0x10] sm:$0x3]  ;;  %v1485_v12 = vld [vmem:[%s1433_s6 + $0x28] sm:$0x3] }
  0x15   : > { %370 = vrot.lane.b32.xlu0 %v266_v0, %s1320_s25  ;;  %372 = vrot.lane.b32.xlu1 %v267_v1, %s1320_s25  ;;  %v992_v22 = vrot.slane %v1187_v18, %v991_v19  ;;  %v999_v23 = vrot.slane %v985_v20, %v991_v19  ;;  %v1458_v1 = vld [vmem:[%s1433_s6 + $0x30] sm:$0xff]  ;;  %v1498_v20 = vld [vmem:[%s1433_s6 + $0x40] sm:$0x3] }
  0x17   : > { %v1005_v24 = vrot.slane %v992_v22, %v1004_v21  ;;  %v1001_v25 = vcombine.high %v999_v23, %v999_v23  ;;  %v1009_v26 = vrot.slane %v999_v23, %v1004_v21  ;;  %v1000_v27 = vcombine.high %v992_v22, %v992_v22  ;;  %v1503_v22 = vld [vmem:[%s1433_s6 + $0x58] sm:$0x3] }
  0x19   : > { %374 = vrot.lane.b32.xlu0 %v268_v2, %s1320_s25  ;;  %376 = vrot.lane.b32.xlu1 %v269_v3, %s1320_s25  ;;  %v1017_v28 = vrot.slane %v1001_v25, %v1004_v21  ;;  %v1013_v29 = vrot.slane %v1000_v27, %v1004_v21  ;;  %v1461_v2 = vld [vmem:[%s1433_s6 + $0x38] sm:$0xff] }
  0x1d   : > { %515 = vrot.lane.b32.xlu0 %v438_v5, %s1318_s18  ;;  %517 = vrot.lane.b32.xlu1 %v439_v6, %s1318_s18 }
  0x21   : > { %519 = vrot.lane.b32.xlu0 %v440_v7, %s1318_s18  ;;  %521 = vrot.lane.b32.xlu1 %v441_v8, %s1318_s18 }
  0x25   : > { %611 = vrot.lane.b32.xlu0 %v438_v5, %s1320_s25  ;;  %613 = vrot.lane.b32.xlu1 %v439_v6, %s1320_s25 }
  0x29   : > { %615 = vrot.lane.b32.xlu0 %v440_v7, %s1320_s25  ;;  %617 = vrot.lane.b32.xlu1 %v441_v8, %s1320_s25 }
  0x2d   : > { %784 = vrot.lane.b32.xlu0 %v1389_v9, %s1318_s18  ;;  %786 = vrot.lane.b32.xlu1 %v1392_v13, %s1318_s18 }
  0x31   : > { %788 = vrot.lane.b32.xlu0 %v1396_v14, %s1318_s18  ;;  %790 = vrot.lane.b32.xlu1 %v1400_v17, %s1318_s18 }
  0x35   : > { %880 = vrot.lane.b32.xlu0 %v1389_v9, %s1320_s25  ;;  %882 = vrot.lane.b32.xlu1 %v1392_v13, %s1320_s25 }
  0x39   : > { %884 = vrot.lane.b32.xlu0 %v1396_v14, %s1320_s25  ;;  %886 = vrot.lane.b32.xlu1 %v1400_v17, %s1320_s25 }
  0x3d   : > { %1019 = vperm.xlu0 %1292, %v1005_v24   ;;  %1023 = vperm.xlu1 %1293, %v1009_v26  }
  0x3e   : > { %s1426_s29 = spop %1192 }
  0x3f   : > { %s1428_s30 = spop %1194 }
  0x40   : > { %s1435_s7 = spop %1196 }
  0x41   : > { %1031 = vperm.xlu0 %1292, %v1017_v28   ;;  %1027 = vperm.xlu1 %1293, %v1013_v29   ;;  %s1437_s8 = spop %1198 }
  0x7f   : > { %v303_v30 = vpop.permute.xlu0 %302  ;;  %v307_v31 = vpop.permute.xlu1 %306 }
  0x80   : > { %1200 = vpush %v303_v30 }
  0x83   : > { %v305_v32 = vpop.permute.xlu0 %304  ;;  %v309_v33 = vpop.permute.xlu1 %308 }
  0x84   : > { %1202 = vpush %v305_v32 }
  0x85   : > { %1204 = vpush %v307_v31 }
  0x86   : > { %1206 = vpush %v309_v33 }
  0x87   : > { %v371_v34 = vpop.permute.xlu0 %370  ;;  %v373_v35 = vpop.permute.xlu1 %372 }
  0x88   : > { %1208 = vpush %v371_v34 }
  0x89   : > { %1210 = vpush %v373_v35 }
  0x8b   : > { %v375_v36 = vpop.permute.xlu0 %374  ;;  %v377_v37 = vpop.permute.xlu1 %376 }
  0x8c   : > { %1212 = vpush %v375_v36 }
  0x8d   : > { %1214 = vpush %v377_v37 }
  0x8e   : > { %1216 = vpush %v438_v5 }
  0x8f   : > { %v516_v38 = vpop.permute.xlu0 %515  ;;  %1218 = vpush %v439_v6  ;;  %v518_v39 = vpop.permute.xlu1 %517  ;;  %v1468_v6 = vld [vmem:[%s1433_s6 + $0x48] sm:$0xff] }
  0x90   : > { %1220 = vpush %v440_v7  ;;  %v1471_v7 = vld [vmem:[%s1433_s6 + $0x50] sm:$0xff] }
  0x91   : > { %1222 = vpush %v441_v8 }
  0x92   : > { %1224 = vpush %v516_v38 }
  0x93   : > { %1226 = vpush %v518_v39  ;;  %v520_v40 = vpop.permute.xlu0 %519  ;;  %v522_v41 = vpop.permute.xlu1 %521 }
  0x94   : > { %1228 = vpush %v520_v40 }
  0x95   : > { %1230 = vpush %v522_v41 }
  0x97   : > { %v612_v42 = vpop.permute.xlu0 %611  ;;  %v614_v43 = vpop.permute.xlu1 %613 }
  0x98   : > { %1232 = vpush %v612_v42 }
  0x99   : > { %1234 = vpush %v614_v43 }
  0x9b   : > { %v616_v44 = vpop.permute.xlu0 %615  ;;  %v618_v45 = vpop.permute.xlu1 %617 }
  0x9c   : > { %1236 = vpush %v616_v44 }
  0x9d   : > { %1238 = vpush %v618_v45 }
  0x9e   : > { %1240 = vpush %v1389_v9 }
  0x9f   : > { %v785_v46 = vpop.permute.xlu0 %784  ;;  %1242 = vpush %v1392_v13  ;;  %v787_v47 = vpop.permute.xlu1 %786 }
  0xa0   : > { %1244 = vpush %v1396_v14 }
  0xa1   : > { %1246 = vpush %v1400_v17 }
  0xa2   : > { %1248 = vpush %v785_v46 }
  0xa3   : > { %1250 = vpush %v787_v47  ;;  %v789_v48 = vpop.permute.xlu0 %788  ;;  %v791_v49 = vpop.permute.xlu1 %790 }
  0xa4   : > { %1252 = vpush %v789_v48 }
  0xa5   : > { %1254 = vpush %v791_v49 }
  0xa7   : > { %v881_v50 = vpop.permute.xlu0 %880  ;;  %v883_v51 = vpop.permute.xlu1 %882 }
  0xa8   : > { %1256 = vpush %v881_v50 }
  0xa9   : > { %1258 = vpush %v883_v51 }
  0xab   : > { %v885_v52 = vpop.permute.xlu0 %884  ;;  %v887_v53 = vpop.permute.xlu1 %886 }
  0xac   : > { %1260 = vpush %v885_v52 }
  0xad   : > { %1262 = vpush %v887_v53 }
  0xb1   : > { %s1201_s9 = spop %1200 }
  0xb2   : > { %v311_v56 = vstv %s1201_s9 }
  0xb3   : > { %v322_v57 = vmul.f32 %v311_v56, %v1440_v54  ;;  %v323_v58 = vmul.f32 %v311_v56, %v1443_v55 }
  0xb5   : > { %s1203_s10 = spop %1202  ;;  %340 = vrot.lane.b32.xlu1 %v323_v58, %s1318_s18  ;;  %338 = vrot.lane.b32.xlu0 %v322_v57, %s1318_s18 }
  0xb6   : > { %v314_v61 = vstv %s1203_s10  ;;  %s1205_s11 = spop %1204 }
  0xb7   : > { %v324_v62 = vmul.f32 %v314_v61, %v1450_v59  ;;  %v325_v63 = vmul.f32 %v314_v61, %v1453_v60  ;;  %v317_v0 = vstv %s1205_s11  ;;  %s1207_s16 = spop %1206 }
  0xb8   : > { %v326_v3 = vmul.f32 %v317_v0, %v1458_v1  ;;  %v327_v4 = vmul.f32 %v317_v0, %v1461_v2  ;;  %v320_v5 = vstv %s1207_s16 }
  0xb9   : > { %344 = vrot.lane.b32.xlu1 %v325_v63, %s1318_s18  ;;  %342 = vrot.lane.b32.xlu0 %v324_v62, %s1318_s18  ;;  %s1209_s17 = spop %1208  ;;  %v328_v8 = vmul.f32 %v320_v5, %v1468_v6  ;;  %v329_v9 = vmul.f32 %v320_v5, %v1471_v7 }
  0xba   : > { %s1211_s19 = spop %1210  ;;  %v379_v10 = vstv %s1209_s17 }
  0xbb   : > { %v390_v13 = vmul.f32 %v379_v10, %v1440_v54  ;;  %v391_v15 = vmul.f32 %v379_v10, %v1443_v55  ;;  %v382_v16 = vstv %s1211_s19 }
  0xbc   : > { %v392_v23 = vmul.f32 %v382_v16, %v1450_v59  ;;  %v393_v24 = vmul.f32 %v382_v16, %v1453_v60 }
  0xbd   : > { %348 = vrot.lane.b32.xlu1 %v327_v4, %s1318_s18  ;;  %346 = vrot.lane.b32.xlu0 %v326_v3, %s1318_s18  ;;  %s1477_s20 = spop %1212 }
  0xbe   : > { %s1479_s21 = spop %1214  ;;  %v385_v25 = vstv %s1477_s20 }
  0xbf   : > { %s1217_s22 = spop %1216  ;;  %v394_v30 = vmul.f32 %v385_v25, %v1458_v1  ;;  %v395_v31 = vmul.f32 %v385_v25, %v1461_v2  ;;  %v388_v32 = vstv %s1479_s21 }
  0xc0   : > { %v443_v14 = vstv %s1217_s22  ;;  %s1219_s23 = spop %1218  ;;  %v396_v37 = vmul.f32 %v388_v32, %v1468_v6  ;;  %v397_v38 = vmul.f32 %v388_v32, %v1471_v7 }
  0xc1   : > { %352 = vrot.lane.b32.xlu1 %v329_v9, %s1318_s18  ;;  %350 = vrot.lane.b32.xlu0 %v328_v8, %s1318_s18  ;;  %v1492_v17 = vmul.f32 %v443_v14, %v1482_v11  ;;  %v446_v18 = vstv %s1219_s23  ;;  %s1221_s24 = spop %1220  ;;  %v1540_v46 = vmul.f32 %v443_v14, %v1440_v54  ;;  %v1543_v47 = vmul.f32 %v443_v14, %v1443_v55 }
  0xc2   : > { %v1495_v19 = vmul.f32 %v446_v18, %v1485_v12  ;;  %v1500_v21 = vstv %s1221_s24  ;;  %s1223_s26 = spop %1222  ;;  %v1557_v61 = vmul.f32 %v446_v18, %v1450_v59  ;;  %v1560_v62 = vmul.f32 %v446_v18, %v1453_v60 }
  0xc3   : > { %s1225_s27 = spop %1224  ;;  %v1512_v26 = vmul.f32 %v1500_v21, %v1498_v20  ;;  %v1514_v27 = vstv %s1223_s26  ;;  %v479_v63 = vrot.slane %v1540_v46, 1  ;;  %v480_v0 = vrot.slane %v1543_v47, 1 }
  0xc4   : > { %v1518_v28 = vmul.f32 %v1514_v27, %v1503_v22  ;;  %v524_v29 = vstv %s1225_s27  ;;  %s1227_s28 = spop %1226  ;;  %v482_v5 = vrot.slane %v1492_v17, 1  ;;  %v1578_v25 = vmul.f32 %v1500_v21, %v1458_v1 }
  0xc5   : > { %408 = vrot.lane.b32.xlu1 %v391_v15, %s1320_s25  ;;  %406 = vrot.lane.b32.xlu0 %v390_v13, %s1320_s25  ;;  %v536_v33 = vmul.f32 %v524_v29, %v1443_v55  ;;  %v537_v34 = vmul.f32 %v524_v29, %v1482_v11  ;;  %v535_v35 = vmul.f32 %v524_v29, %v1440_v54  ;;  %v527_v36 = vstv %s1227_s28  ;;  %s1229_s4 = spop %1228 }
  0xc6   : > { %v538_v41 = vmul.f32 %v527_v36, %v1450_v59  ;;  %s1231_s5 = spop %1230  ;;  %v539_v43 = vmul.f32 %v527_v36, %v1453_v60  ;;  %v540_v44 = vmul.f32 %v527_v36, %v1485_v12  ;;  %v530_v45 = vstv %s1229_s4 }
  0xc7   : > { %v560_v39 = vrot.slane %v536_v33, 1  ;;  %v562_v40 = vrot.slane %v537_v34, 1  ;;  %v559_v42 = vrot.slane %v535_v35, 1  ;;  %v533_v48 = vstv %s1231_s5 }
  0xc8   : > { %v564_v49 = vrot.slane %v538_v41, 1  ;;  %v541_v51 = vmul.f32 %v530_v45, %v1458_v1  ;;  %v542_v52 = vmul.f32 %v530_v45, %v1461_v2  ;;  %v565_v53 = vrot.slane %v539_v43, 1 }
  0xc9   : > { %412 = vrot.lane.b32.xlu1 %v393_v24, %s1320_s25  ;;  %410 = vrot.lane.b32.xlu0 %v392_v23, %s1320_s25  ;;  %s1535_s6 = spop %1232  ;;  %v563_v50 = vsel %vm478_vm0, %v560_v39, %v562_v40  ;;  %v567_v56 = vrot.slane %v540_v44, 1  ;;  %v561_v57 = vsel %vm478_vm0, %v559_v42, %v560_v39  ;;  %v543_v58 = vmul.f32 %v530_v45, %v1498_v20 }
  0xca   : > { %s1537_s9 = spop %1234  ;;  %v544_v3 = vmul.f32 %v533_v48, %v1468_v6  ;;  %v545_v4 = vmul.f32 %v533_v48, %v1471_v7  ;;  %v569_v8 = vrot.slane %v541_v51, 1  ;;  %v570_v9 = vrot.slane %v542_v52, 1 }
  0xcb   : > { %v546_v10 = vmul.f32 %v533_v48, %v1503_v22  ;;  %v572_v13 = vrot.slane %v543_v58, 1  ;;  %v568_v14 = vsel %vm478_vm0, %v565_v53, %v567_v56  ;;  %v566_v15 = vsel %vm478_vm0, %v564_v49, %v565_v53 }
  0xcc   : > { %v620_v16 = vstv %s1535_s6  ;;  %v574_v29 = vrot.slane %v544_v3, 1  ;;  %v623_v36 = vstv %s1537_s9  ;;  %v1598_v41 = vmul.f32 %v1500_v21, %v1461_v2 }
  0xcd   : > { %416 = vrot.lane.b32.xlu1 %v395_v31, %s1320_s25  ;;  %414 = vrot.lane.b32.xlu0 %v394_v30, %s1320_s25  ;;  %s1545_s10 = spop %1236  ;;  %v575_v30 = vrot.slane %v545_v4, 1  ;;  %v577_v33 = vrot.slane %v546_v10, 1  ;;  %v631_v34 = vmul.f32 %v620_v16, %v1440_v54  ;;  %v632_v35 = vmul.f32 %v620_v16, %v1443_v55 }
  0xce   : > { %s1552_s11 = spop %1238  ;;  %v633_v39 = vmul.f32 %v620_v16, %v1482_v11  ;;  %v634_v48 = vmul.f32 %v623_v36, %v1450_v59  ;;  %v635_v49 = vmul.f32 %v623_v36, %v1453_v60  ;;  %v636_v52 = vmul.f32 %v623_v36, %v1485_v12 }
  0xcf   : > { %s1241_s16 = spop %1240  ;;  %v655_v21 = vrot.slane %v631_v34, 1  ;;  %v656_v51 = vrot.slane %v632_v35, 1  ;;  %v576_v58 = vsel %vm478_vm0, %v574_v29, %v575_v30  ;;  %v629_v10 = vstv %s1552_s11 }
  0xd0   : > { %s1243_s17 = spop %1242  ;;  %v1580_v31 = vstv %s1241_s16  ;;  %v658_v56 = vrot.slane %v633_v39, 1  ;;  %v661_v16 = vrot.slane %v635_v49, 1  ;;  %v640_v36 = vmul.f32 %v629_v10, %v1468_v6 }
  0xd1   : > { %420 = vrot.lane.b32.xlu1 %v397_v38, %s1320_s25  ;;  %418 = vrot.lane.b32.xlu0 %v396_v37, %s1320_s25  ;;  %s1245_s19 = spop %1244  ;;  %v1582_v32 = vstv %s1243_s17  ;;  %v573_v37 = vsel %vm478_vm0, %v570_v9, %v572_v13  ;;  %v571_v38 = vsel %vm478_vm0, %v569_v8, %v570_v9  ;;  %v1594_v40 = vmul.f32 %v1580_v31, %v1482_v11 }
  0xd2   : > { %s1247_s20 = spop %1246  ;;  %v1602_v42 = vmul.f32 %v1582_v32, %v1485_v12  ;;  %v1604_v43 = vstv %s1245_s19  ;;  %v1631_v13 = vmul.f32 %v1514_v27, %v1468_v6  ;;  %v657_v34 = vsel %vm478_vm0, %v655_v21, %v656_v51 }
  0xd3   : > { %v1606_v44 = vstv %s1247_s20  ;;  %v1617_v53 = vmul.f32 %v1604_v43, %v1498_v20  ;;  %v659_v35 = vsel %vm478_vm0, %v656_v51, %v658_v56  ;;  %s1249_s21 = spop %1248  ;;  %v1648_v49 = vmul.f32 %v1580_v31, %v1440_v54 }
  0xd4   : > { %v1623_v3 = vmul.f32 %v1606_v44, %v1503_v22  ;;  %s1251_s22 = spop %1250  ;;  %v1916_v17 = vrot.slane %v1560_v62, 1  ;;  %v1919_v46 = vrot.slane %v1512_v26, 1 }
  0xd5   : > { %581 = vrot.lane.b32.xlu1 %v563_v50, %s1318_s18  ;;  %579 = vrot.lane.b32.xlu0 %v561_v57, %s1318_s18  ;;  %v626_v50 = vstv %s1545_s10  ;;  %v578_v57 = vsel %vm478_vm0, %v575_v30, %v577_v33  ;;  %v663_v33 = vrot.slane %v636_v52, 1  ;;  %s1253_s23 = spop %1252 }
  0xd6   : > { %v637_v4 = vmul.f32 %v626_v50, %v1458_v1  ;;  %v638_v8 = vmul.f32 %v626_v50, %v1461_v2  ;;  %v639_v9 = vmul.f32 %v626_v50, %v1498_v20  ;;  %s1255_s24 = spop %1254 }
  0xd7   : > { %v664_v56 = vsel %vm478_vm0, %v661_v16, %v663_v33  ;;  %v796_v33 = vstv %s1251_s22 }
  0xd8   : > { %v666_v39 = vrot.slane %v638_v8, 1  ;;  %v670_v8 = vrot.slane %v640_v36, 1  ;;  %v807_v50 = vmul.f32 %v796_v33, %v1450_v59  ;;  %v808_v21 = vmul.f32 %v796_v33, %v1453_v60 }
  0xd9   : > { %585 = vrot.lane.b32.xlu1 %v568_v14, %s1318_s18  ;;  %583 = vrot.lane.b32.xlu0 %v566_v15, %s1318_s18  ;;  %v1635_v14 = vmul.f32 %v1514_v27, %v1471_v7  ;;  %v660_v15 = vrot.slane %v634_v48, 1  ;;  %v641_v27 = vmul.f32 %v629_v10, %v1471_v7  ;;  %v668_v48 = vrot.slane %v639_v9, 1  ;;  %s1257_s26 = spop %1256 }
  0xda   : > { %s1259_s27 = spop %1258 }
  0xdb   : > { %v662_v52 = vsel %vm478_vm0, %v660_v15, %v661_v16  ;;  %v671_v9 = vrot.slane %v641_v27, 1  ;;  %v1667_v15 = vmul.f32 %v1582_v32, %v1453_v60  ;;  %v1924_v26 = vrot.slane %v1635_v14, 1 }
  0xdd   : > { %589 = vrot.lane.b32.xlu1 %v573_v37, %s1318_s18  ;;  %587 = vrot.lane.b32.xlu0 %v571_v38, %s1318_s18  ;;  %v642_v37 = vmul.f32 %v629_v10, %v1503_v22  ;;  %v665_v38 = vrot.slane %v637_v4, 1  ;;  %v793_v4 = vstv %s1249_s21  ;;  %s1261_s28 = spop %1260 }
  0xde   : > { %v804_v36 = vmul.f32 %v793_v4, %v1440_v54  ;;  %v805_v27 = vmul.f32 %v793_v4, %v1443_v55  ;;  %s1263_s4 = spop %1262 }
  0xdf   : > { %v673_v10 = vrot.slane %v642_v37, 1  ;;  %v667_v16 = vsel %vm478_vm0, %v665_v38, %v666_v39  ;;  %v806_v37 = vmul.f32 %v793_v4, %v1482_v11  ;;  %v751_v38 = vrot.slane %v1594_v40, 2 }
  0xe0   : > { %v799_v4 = vstv %s1253_s23  ;;  %v733_v40 = vmul.f32 %v1606_v44, %v1471_v7  ;;  %v829_v51 = vrot.slane %v805_v27, 2  ;;  %v761_v27 = vrot.slane %v1617_v53, 2 }
  0xe1   : > { %593 = vrot.lane.b32.xlu1 %v578_v57, %s1318_s18  ;;  %591 = vrot.lane.b32.xlu0 %v576_v58, %s1318_s18  ;;  %v1659_v57 = vmul.f32 %v1580_v31, %v1443_v55  ;;  %v1663_v58 = vmul.f32 %v1582_v32, %v1450_v59  ;;  %v754_v31 = vrot.slane %v1667_v15, 2  ;;  %v831_v15 = vrot.slane %v806_v37, 2 }
  0xe2   : > { %v811_v29 = vmul.f32 %v799_v4, %v1461_v2  ;;  %v812_v30 = vmul.f32 %v799_v4, %v1498_v20  ;;  %v764_v23 = vrot.slane %v733_v40, 2  ;;  %v1714_v53 = vsel %vm478_vm0, %v480_v0, %v482_v5 }
  0xe3   : > { %v749_v32 = vrot.slane %v1659_v57, 2  ;;  %v809_v57 = vmul.f32 %v796_v33, %v1485_v12  ;;  %v672_v33 = vsel %vm478_vm0, %v670_v8, %v671_v9  ;;  %v832_v24 = vsel %vm747_vm1, %v829_v51, %v831_v15 }
  0xe4   : > { %v839_v8 = vrot.slane %v811_v29, 2  ;;  %v1915_v29 = vrot.slane %v1495_v19, 1  ;;  %v1923_v40 = vrot.slane %v1518_v28, 1  ;;  %v889_v15 = vstv %s1257_s26 }
  0xe5   : > { %677 = vrot.lane.b32.xlu1 %v659_v35, %s1320_s25  ;;  %675 = vrot.lane.b32.xlu0 %v657_v34, %s1320_s25  ;;  %v669_v34 = vsel %vm478_vm0, %v666_v39, %v668_v48  ;;  %v1674_v35 = vmul.f32 %v1604_v43, %v1458_v1  ;;  %v753_v39 = vrot.slane %v1663_v58, 2  ;;  %v730_v48 = vmul.f32 %v1604_v43, %v1461_v2 }
  0xe6   : > { %v828_v43 = vrot.slane %v804_v36, 2  ;;  %v834_v36 = vrot.slane %v808_v21, 2  ;;  %v836_v18 = vrot.slane %v809_v57, 2  ;;  %v1761_v57 = vsel %vm478_vm0, %v1924_v26, %v1923_v40 }
  0xe7   : > { %v758_v58 = vrot.slane %v1674_v35, 2  ;;  %v759_v45 = vrot.slane %v730_v48, 2  ;;  %v833_v35 = vrot.slane %v807_v50, 2  ;;  %v841_v50 = vrot.slane %v812_v30, 2 }
  0xe8   : > { %v830_v48 = vsel %vm747_vm1, %v828_v43, %v829_v51  ;;  %v1723_v51 = vsel %vm478_vm0, %v479_v63, %v480_v0  ;;  %v1730_v30 = vsel %vm478_vm0, %v1916_v17, %v1915_v29  ;;  %v837_v5 = vsel %vm747_vm1, %v834_v36, %v836_v18 }
  0xe9   : > { %681 = vrot.lane.b32.xlu1 %v664_v56, %s1320_s25  ;;  %679 = vrot.lane.b32.xlu0 %v662_v52, %s1320_s25  ;;  %v756_v56 = vrot.slane %v1602_v42, 2  ;;  %v732_v52 = vmul.f32 %v1606_v44, %v1468_v6  ;;  %v810_v42 = vmul.f32 %v799_v4, %v1458_v1  ;;  %v674_v44 = vsel %vm478_vm0, %v671_v9, %v673_v10 }
  0xea   : > { %v1917_v9 = vmov %v1916_v17  ;;  %v1918_v4 = vrot.slane %v1557_v61, 1  ;;  %v1920_v63 = vrot.slane %v1598_v41, 1  ;;  %v1925_v43 = vmov %v1924_v26 }
  0xeb   : > { %v763_v37 = vrot.slane %v732_v52, 2  ;;  %v838_v10 = vrot.slane %v810_v42, 2  ;;  %v1922_v52 = vrot.slane %v1578_v25, 1  ;;  %v1926_v41 = vrot.slane %v1631_v13, 1 }
  0xec   : > { %v1738_v47 = vsel %vm478_vm0, %v1918_v4, %v1917_v9  ;;  %v1745_v19 = vsel %vm478_vm0, %v1920_v63, %v1919_v46  ;;  %v1921_v0 = vmov %v1920_v63  ;;  %v1927_v42 = vrot.slane %v1648_v49, 2 }
  0xed   : > { %685 = vrot.lane.b32.xlu1 %v669_v34, %s1320_s25  ;;  %683 = vrot.lane.b32.xlu0 %v667_v16, %s1320_s25  ;;  %v802_v34 = vstv %s1255_s24  ;;  %v766_v16 = vrot.slane %v1623_v3, 2  ;;  %v835_v3 = vsel %vm747_vm1, %v833_v35, %v834_v36  ;;  %v1752_v18 = vsel %vm478_vm0, %v1922_v52, %v1921_v0 }
  0xee   : > { %v813_v21 = vmul.f32 %v802_v34, %v1468_v6  ;;  %v814_v62 = vmul.f32 %v802_v34, %v1471_v7  ;;  %v815_v61 = vmul.f32 %v802_v34, %v1503_v22  ;;  %v1768_v25 = vsel %vm478_vm0, %v1926_v41, %v1925_v43 }
  0xef   : > { %v1775_v28 = vsel %vm747_vm1, %v1927_v42, %v749_v32  ;;  %v1781_v14 = vsel %vm747_vm1, %v753_v39, %v754_v31  ;;  %v1784_v13 = vsel %vm747_vm1, %v754_v31, %v756_v56  ;;  %v1793_v49 = vsel %vm747_vm1, %v763_v37, %v764_v23 }
  0xf0   : > { %v1796_v35 = vsel %vm747_vm1, %v764_v23, %v766_v16  ;;  %v843_v31 = vrot.slane %v813_v21, 2  ;;  %v900_v39 = vmul.f32 %v889_v15, %v1440_v54  ;;  %v844_v56 = vrot.slane %v814_v62, 2 }
  0xf1   : > { %689 = vrot.lane.b32.xlu1 %v674_v44, %s1320_s25  ;;  %687 = vrot.lane.b32.xlu0 %v672_v33, %s1320_s25  ;;  %v1778_v44 = vsel %vm747_vm1, %v749_v32, %v751_v38  ;;  %v1787_v33 = vsel %vm747_vm1, %v758_v58, %v759_v45  ;;  %v840_v32 = vsel %vm747_vm1, %v838_v10, %v839_v8  ;;  %v846_v58 = vrot.slane %v815_v61, 2 }
  0xf2   : > { %v842_v38 = vsel %vm747_vm1, %v839_v8, %v841_v50  ;;  %v902_v36 = vmul.f32 %v889_v15, %v1482_v11  ;;  %v892_v23 = vstv %s1259_s27  ;;  %v924_v37 = vrot.slane %v900_v39, 2  ;;  %v1838_v39 = vpop.permute.xlu0 %1019 }
  0xf3   : > { %v903_v16 = vmul.f32 %v892_v23, %v1450_v59  ;;  %v845_v8 = vsel %vm747_vm1, %v843_v31, %v844_v56  ;;  %v847_v50 = vsel %vm747_vm1, %v844_v56, %v846_v58  ;;  %v905_v11 = vmul.f32 %v892_v23, %v1485_v12 }
  0xf4   : > { %v927_v10 = vrot.slane %v902_v36, 2 }
  0xf5   : > { %848 = vrot.lane.b32.xlu1 %v830_v48, %s1318_s18  ;;  %850 = vrot.lane.b32.xlu0 %v832_v24, %s1318_s18  ;;  %v1790_v24 = vsel %vm747_vm1, %v759_v45, %v761_v27  ;;  %v901_v45 = vmul.f32 %v889_v15, %v1443_v55  ;;  %v895_v27 = vstv %s1261_s28  ;;  %v904_v48 = vmul.f32 %v892_v23, %v1453_v60 }
  0xf6   : > { %v929_v21 = vrot.slane %v903_v16, 2  ;;  %v906_v17 = vmul.f32 %v895_v27, %v1458_v1  ;;  %v932_v9 = vrot.slane %v905_v11, 2  ;;  %v908_v63 = vmul.f32 %v895_v27, %v1498_v20  ;;  %v1843_v58 = vpop.permute.xlu0 %1031 }
  0xf7   : > { %v925_v34 = vrot.slane %v901_v45, 2  ;;  %v930_v29 = vrot.slane %v904_v48, 2  ;;  %v272_v45 = vstv %s1426_s29 }
  0xf8   : > { %v934_v12 = vrot.slane %v906_v17, 2  ;;  %v937_v61 = vrot.slane %v908_v63, 2  ;;  %v286_v36 = vmul.f32 %v272_v45, %v1440_v54  ;;  %v287_v23 = vmul.f32 %v272_v45, %v1443_v55 }
  0xf9   : > { %852 = vrot.lane.b32.xlu1 %v835_v3, %s1318_s18  ;;  %854 = vrot.lane.b32.xlu0 %v837_v5, %s1318_s18  ;;  %v898_v3 = vstv %s1263_s4  ;;  %v907_v5 = vmul.f32 %v895_v27, %v1461_v2  ;;  %v926_v4 = vsel %vm747_vm1, %v924_v37, %v925_v34  ;;  %v928_v46 = vsel %vm747_vm1, %v925_v34, %v927_v10 }
  0xfa   : > { %v931_v52 = vsel %vm747_vm1, %v929_v21, %v930_v29  ;;  %v909_v62 = vmul.f32 %v898_v3, %v1468_v6  ;;  %v933_v40 = vsel %vm747_vm1, %v930_v29, %v932_v9  ;;  %v910_v26 = vmul.f32 %v898_v3, %v1471_v7 }
  0xfb   : > { %v935_v0 = vrot.slane %v907_v5, 2  ;;  %v911_v43 = vmul.f32 %v898_v3, %v1503_v22  ;;  %v276_v27 = vstv %s1428_s30 }
  0xfc   : > { %v939_v20 = vrot.slane %v909_v62, 2  ;;  %v940_v41 = vrot.slane %v910_v26, 2  ;;  %v288_v10 = vmul.f32 %v276_v27, %v1450_v59 }
  0xfd   : > { %856 = vrot.lane.b32.xlu1 %v840_v32, %s1318_s18  ;;  %858 = vrot.lane.b32.xlu0 %v842_v38, %s1318_s18  ;;  %v942_v15 = vrot.slane %v911_v43, 2  ;;  %v936_v42 = vsel %vm747_vm1, %v934_v12, %v935_v0  ;;  %v938_v32 = vsel %vm747_vm1, %v935_v0, %v937_v61  ;;  %v1836_v38 = vpop.permute.xlu1 %1023 }
  0xfe   : > { %v941_v31 = vsel %vm747_vm1, %v939_v20, %v940_v41 }
  0xff   : > { %v943_v22 = vsel %vm747_vm1, %v940_v41, %v942_v15 }
 0x101   : > { %860 = vrot.lane.b32.xlu1 %v845_v8, %s1318_s18  ;;  %862 = vrot.lane.b32.xlu0 %v847_v50, %s1318_s18  ;;  %v1841_v56 = vpop.permute.xlu1 %1027  ;;  %v289_v8 = vmul.f32 %v276_v27, %v1453_v60  ;;  %v280_v50 = vstv %s1435_s7  ;;  %s1190_s18 = sshll.u32 %s1933_s12, 6 }
 0x102   : > { %v290_v17 = vmul.f32 %v280_v50, %v1458_v1  ;;  %v291_v54 = vmul.f32 %v280_v50, %v1461_v2  ;;  %v284_v2 = vstv %s1437_s8  ;;  %s1876_s30 = scalar_lea.vmem %s1914_s3, %s1190_s18 }
 0x105   : > { %944 = vrot.lane.b32.xlu1 %v926_v4, %s1320_s25  ;;  %946 = vrot.lane.b32.xlu0 %v928_v46, %s1320_s25 }
 0x109   : > { %948 = vrot.lane.b32.xlu1 %v931_v52, %s1320_s25  ;;  %950 = vrot.lane.b32.xlu0 %v933_v40, %s1320_s25 }
 0x10d   : > { %952 = vrot.lane.b32.xlu1 %v936_v42, %s1320_s25  ;;  %954 = vrot.lane.b32.xlu0 %v938_v32, %s1320_s25  ;;  %v292_v42 = vmul.f32 %v284_v2, %v1468_v6  ;;  %v293_v32 = vmul.f32 %v284_v2, %v1471_v7 }
 0x111   : > { %956 = vrot.lane.b32.xlu1 %v941_v31, %s1320_s25  ;;  %958 = vrot.lane.b32.xlu0 %v943_v22, %s1320_s25 }
 0x127   : > { %v341_v37 = vpop.permute.xlu1 %340  ;;  %v339_v34 = vpop.permute.xlu0 %338 }
 0x128   : > { %v363_v16 = vadd.f32 %v341_v37, %v287_v23  ;;  %v362_v48 = vadd.f32 %v339_v34, %v286_v36 }
 0x12b   : > { %v345_v11 = vpop.permute.xlu1 %344  ;;  %v343_v3 = vpop.permute.xlu0 %342 }
 0x12c   : > { %v365_v21 = vadd.f32 %v345_v11, %v289_v8  ;;  %v364_v29 = vadd.f32 %v343_v3, %v288_v10 }
 0x12f   : > { %v349_v5 = vpop.permute.xlu1 %348  ;;  %v347_v55 = vpop.permute.xlu0 %346 }
 0x130   : > { %v367_v9 = vadd.f32 %v349_v5, %v291_v54  ;;  %v366_v4 = vadd.f32 %v347_v55, %v290_v17 }
 0x133   : > { %v353_v46 = vpop.permute.xlu1 %352  ;;  %v351_v63 = vpop.permute.xlu0 %350 }
 0x134   : > { %v368_v45 = vadd.f32 %v351_v63, %v292_v42 }
 0x137   : > { %v409_v12 = vpop.permute.xlu1 %408  ;;  %v407_v59 = vpop.permute.xlu0 %406 }
 0x138   : > { %v431_v0 = vadd.f32 %v409_v12, %v363_v16  ;;  %v430_v60 = vadd.f32 %v407_v59, %v362_v48 }
 0x13a   : > { %v508_v52 = vadd.f32 %v1714_v53, %v431_v0  ;;  %v507_v62 = vadd.f32 %v1723_v51, %v430_v60  ;;  %v369_v53 = vadd.f32 %v353_v46, %v293_v32 }
 0x13b   : > { %v413_v61 = vpop.permute.xlu1 %412  ;;  %v411_v40 = vpop.permute.xlu0 %410 }
 0x13c   : > { %v433_v1 = vadd.f32 %v413_v61, %v365_v21  ;;  %v432_v26 = vadd.f32 %v411_v40, %v364_v29 }
 0x13e   : > { %v510_v43 = vadd.f32 %v1730_v30, %v433_v1  ;;  %v509_v20 = vadd.f32 %v1738_v47, %v432_v26 }
 0x13f   : > { %v417_v41 = vpop.permute.xlu1 %416  ;;  %v415_v15 = vpop.permute.xlu0 %414 }
 0x140   : > { %v435_v31 = vadd.f32 %v417_v41, %v367_v9  ;;  %v434_v22 = vadd.f32 %v415_v15, %v366_v4 }
 0x142   : > { %v512_v51 = vadd.f32 %v1745_v19, %v435_v31  ;;  %v511_v36 = vadd.f32 %v1752_v18, %v434_v22 }
 0x143   : > { %v421_v23 = vpop.permute.xlu1 %420  ;;  %v419_v27 = vpop.permute.xlu0 %418 }
 0x144   : > { %v437_v37 = vadd.f32 %v421_v23, %v369_v53  ;;  %v436_v30 = vadd.f32 %v419_v27, %v368_v45 }
 0x146   : > { %v514_v47 = vadd.f32 %v1761_v57, %v437_v37  ;;  %v513_v34 = vadd.f32 %v1768_v25, %v436_v30 }
 0x147   : > { %v582_v16 = vpop.permute.xlu1 %581  ;;  %v580_v6 = vpop.permute.xlu0 %579 }
 0x148   : > { %v604_v3 = vadd.f32 %v582_v16, %v508_v52  ;;  %v603_v19 = vadd.f32 %v580_v6, %v507_v62 }
 0x14b   : > { %v586_v48 = vpop.permute.xlu1 %585  ;;  %v584_v7 = vpop.permute.xlu0 %583 }
 0x14c   : > { %v606_v54 = vadd.f32 %v586_v48, %v510_v43  ;;  %v605_v5 = vadd.f32 %v584_v7, %v509_v20 }
 0x14f   : > { %v590_v10 = vpop.permute.xlu1 %589  ;;  %v588_v8 = vpop.permute.xlu0 %587 }
 0x150   : > { %v608_v63 = vadd.f32 %v590_v10, %v512_v51  ;;  %v607_v12 = vadd.f32 %v588_v8, %v511_v36 }
 0x153   : > { %v594_v50 = vpop.permute.xlu1 %593  ;;  %v592_v11 = vpop.permute.xlu0 %591 }
 0x154   : > { %v610_v40 = vadd.f32 %v594_v50, %v514_v47  ;;  %v609_v1 = vadd.f32 %v592_v11, %v513_v34 }
 0x157   : > { %v678_v21 = vpop.permute.xlu1 %677  ;;  %v676_v18 = vpop.permute.xlu0 %675 }
 0x158   : > { %v700_v29 = vadd.f32 %v678_v21, %v604_v3  ;;  %v699_v17 = vadd.f32 %v676_v18, %v603_v19 }
 0x15a   : > { %v776_v57 = vadd.f32 %v1775_v28, %v699_v17  ;;  %v777_v25 = vadd.f32 %v1778_v44, %v700_v29 }
 0x15b   : > { %v682_v55 = vpop.permute.xlu1 %681  ;;  %v680_v9 = vpop.permute.xlu0 %679 }
 0x15c   : > { %v702_v4 = vadd.f32 %v682_v55, %v606_v54  ;;  %v701_v46 = vadd.f32 %v680_v9, %v605_v5 }
 0x15e   : > { %v778_v59 = vadd.f32 %v1781_v14, %v701_v46  ;;  %v779_v0 = vadd.f32 %v1784_v13, %v702_v4 }
 0x15f   : > { %v686_v60 = vpop.permute.xlu1 %685  ;;  %v684_v52 = vpop.permute.xlu0 %683 }
 0x160   : > { %v704_v62 = vadd.f32 %v686_v60, %v608_v63  ;;  %v703_v61 = vadd.f32 %v684_v52, %v607_v12 }
 0x162   : > { %v780_v28 = vadd.f32 %v1787_v33, %v703_v61  ;;  %v781_v44 = vadd.f32 %v1790_v24, %v704_v62 }
 0x163   : > { %v690_v26 = vpop.permute.xlu1 %689  ;;  %v688_v2 = vpop.permute.xlu0 %687 }
 0x164   : > { %v706_v43 = vadd.f32 %v690_v26, %v610_v40  ;;  %v705_v20 = vadd.f32 %v688_v2, %v609_v1 }
 0x166   : > { %v782_v41 = vadd.f32 %v1793_v49, %v705_v20  ;;  %v783_v14 = vadd.f32 %v1796_v35, %v706_v43 }
 0x167   : > { %v849_v13 = vpop.permute.xlu1 %848  ;;  %v851_v15 = vpop.permute.xlu0 %850 }
 0x168   : > { %v872_v33 = vadd.f32 %v849_v13, %v776_v57  ;;  %v873_v51 = vadd.f32 %v851_v15, %v777_v25 }
 0x16b   : > { %v853_v42 = vpop.permute.xlu1 %852  ;;  %v855_v32 = vpop.permute.xlu0 %854 }
 0x16c   : > { %v874_v49 = vadd.f32 %v853_v42, %v778_v59  ;;  %v875_v35 = vadd.f32 %v855_v32, %v779_v0 }
 0x16f   : > { %v857_v31 = vpop.permute.xlu1 %856  ;;  %v859_v22 = vpop.permute.xlu0 %858 }
 0x170   : > { %v876_v48 = vadd.f32 %v857_v31, %v780_v28  ;;  %v877_v7 = vadd.f32 %v859_v22, %v781_v44 }
 0x173   : > { %v861_v53 = vpop.permute.xlu1 %860  ;;  %v863_v45 = vpop.permute.xlu0 %862 }
 0x174   : > { %v878_v19 = vadd.f32 %v861_v53, %v782_v41  ;;  %v879_v21 = vadd.f32 %v863_v45, %v783_v14 }
 0x177   : > { %v945_v24 = vpop.permute.xlu1 %944  ;;  %v947_v36 = vpop.permute.xlu0 %946 }
 0x178   : > { %v968_v23 = vadd.f32 %v945_v24, %v872_v33  ;;  %v969_v27 = vadd.f32 %v947_v36, %v873_v51 }
 0x17a   : > { %v1034_v37 = vadd.f32 %v1838_v39, %v968_v23  ;;  %v1035_v30 = vadd.f32 %v1838_v39, %v969_v27 }
 0x17b   : > { %v949_v47 = vpop.permute.xlu1 %948  ;;  %v951_v34 = vpop.permute.xlu0 %950 }
 0x17c   : > { %1043 = vst.msk [vmem:[%s1876_s30] sm:$0xff] %vm1042_vm2, %v1034_v37  ;;  %1044 = vst.msk [vmem:[%s1876_s30 + $0x8] sm:$0xff] %vm1042_vm2, %v1035_v30  ;;  %v970_v16 = vadd.f32 %v949_v47, %v874_v49  ;;  %v971_v6 = vadd.f32 %v951_v34, %v875_v35 }
 0x17e   : > { %v1036_v10 = vadd.f32 %v1836_v38, %v970_v16  ;;  %v1037_v8 = vadd.f32 %v1836_v38, %v971_v6 }
 0x17f   : > { %v953_v50 = vpop.permute.xlu1 %952  ;;  %v955_v11 = vpop.permute.xlu0 %954 }
 0x180   : > { %1045 = vst.msk [vmem:[%s1876_s30 + $0x10] sm:$0xff] %vm1042_vm2, %v1036_v10  ;;  %1046 = vst.msk [vmem:[%s1876_s30 + $0x18] sm:$0xff] %vm1042_vm2, %v1037_v8  ;;  %v972_v39 = vadd.f32 %v953_v50, %v876_v48  ;;  %v973_v3 = vadd.f32 %v955_v11, %v877_v7 }
 0x182   : > { %v1038_v18 = vadd.f32 %v1841_v56, %v972_v39  ;;  %v1039_v29 = vadd.f32 %v1841_v56, %v973_v3 }
 0x183   : > { %v957_v17 = vpop.permute.xlu1 %956  ;;  %v959_v54 = vpop.permute.xlu0 %958 }
 0x184   : > { %1047 = vst.msk [vmem:[%s1876_s30 + $0x20] sm:$0xff] %vm1042_vm2, %v1038_v18  ;;  %1048 = vst.msk [vmem:[%s1876_s30 + $0x28] sm:$0xff] %vm1042_vm2, %v1039_v29  ;;  %v974_v38 = vadd.f32 %v957_v17, %v878_v19  ;;  %v975_v5 = vadd.f32 %v959_v54, %v879_v21 }
 0x186   : > { %v1040_v57 = vadd.f32 %v1843_v58, %v974_v38  ;;  %v1041_v25 = vadd.f32 %v1843_v58, %v975_v5 }
 0x188   : > { %1049 = vst.msk [vmem:[%s1876_s30 + $0x30] sm:$0xff] %vm1042_vm2, %v1040_v57  ;;  %1050 = vst.msk [vmem:[%s1876_s30 + $0x38] sm:$0xff] %vm1042_vm2, %v1041_v25 }
 0x189 PF: > { %s13_s14 = sadd.s32 1, %s1316_s14   ;;  %s1928_s12 = smov %s1312_s13 }
 0x18a   : > { %p10_p5 = scmp.ge.s32.totalorder %s13_s14, 4   ;;  %s1929_s13 = smov %s1931_s15 }
 0x18c   :  { %12 = sbr.rel (!%p10_p5) target bundleno = 2 (0x2), region = 68 }

// kernel: fica_forward.22
= control target key start
LH: loop header
LB: loop body
LE: loop exit
PB: predicated region body
PF: predicated region fallthrough
CT: control target
= control target key end

     0   :  { %s878_s15 = smov 0   ;;  %s880_s16 = smov 0   ;;  %s940_s0 = inlined_call_operand.vmem [shape: f32[2,2,2,2], index: 0, kind: input, shape index: {}]   ;;  %s941_s1 = inlined_call_operand.vmem [shape: f32[2,2,2,256], index: 1, kind: input, shape index: {}]   ;;  %s942_s2 = inlined_call_operand.vmem [shape: f32[2,4,2], index: 2, kind: input, shape index: {}]   ;;  %s943_s3 = inlined_call_operand.vmem [shape: f32[2,4,256], index: 3, kind: input, shape index: {}]   ;;  %s944_s4 = inlined_call_operand.vmem [shape: f32[2,4,256], index: 4, kind: output, shape index: {}]  }
   0x1   :  { %s882_s17 = smov 0  }
   0x2 LB: > { %s26_s18 = sadd.s32 1, %s846_s16  ;;  %p770_p0 = scmp.ge.s32.totalorder %s850_s17, 1  ;;  %s850_s17 = sphi %s882_s17, %s14_s17   ;;  %s846_s16 = sphi %s880_s16, %s946_s16   ;;  %s842_s15 = sphi %s878_s15, %s945_s15  }
   0x3   : > { %p28_p1 = scmp.ge.s32.totalorder %s26_s18, 2  ;;  %p210_p2 = scmp.lt.s32.totalorder %s850_s17, 3 }
   0x5   : > { %s948_s18 = smov (%p28_p1, %s26_s18), 0  ;;  %p211_p3 = pnand %p770_p0, %p210_p2 }
   0x6   : > { %p258_p4 = scmp.lt.s32.totalorder (!%p211_p3), %s842_s15, 1 }
   0x7   : > { %214 = sbr.rel (%p211_p3) target bundleno = 420 (0x1a4), region = 36 }
   0xc   : > { %v852_v0 = vmov 0.0   ;;  %s950_s15 = smov (!%p258_p4, %s842_s15), 1  ;;  %vm308_vm0 = vcmask 1041408   ;;  %vm304_vm1 = vcmask 15360   ;;  %v384_v10 = vld [vmem:[%s942_s2] sm:$0xf] }
   0xd   : > { %377 = vmatprep.mubr.f32.mxu0 %v852_v0  ;;  %469 = vmatprep.mubr.f32.mxu1 %v852_v0  ;;  %s896_s19 = sshll.u32 %s950_s15, 3  ;;  %s798_s20 = sshll.u32 %s950_s15, 2  ;;  %v789_v12 = vld [vmem:[%s942_s2 + $0x4] sm:$0xf] }
   0xe   : > { %s271_s23 = scalar_lea.vmem %s941_s1, %s896_s19  ;;  %s262_s26 = scalar_lea.vmem %s940_s0, %s798_s20 }
   0xf   : > { %v779_v1 = vld.sshfl [vmem:[%s271_s23] sm:$0x33 pattern:$0x76325410]  ;;  %s281_s7 = scalar_lea.vmem %s943_s3, %s896_s19  ;;  %s291_s10 = scalar_lea.vmem %s944_s4, %s896_s19 }
  0x10   : > { %v303_v2 = vcombine.high %v779_v1, %v779_v1  ;;  %v785_v3 = vld.sshfl [vmem:[%s271_s23 + $0x4] sm:$0x33 pattern:$0x76325410]  ;;  %v293_v5 = vld [vmem:[%s262_s26] sm:$0x3] }
  0x11   : > { %v397_v4 = vcombine.high %v785_v3, %v785_v3  ;;  %v783_v6 = vld [vmem:[%s262_s26 + $0x2] sm:$0x3] }
  0x12   : > { %780 = vmatprep.subr.msk.mxu0 %vm308_vm0, %v303_v2  ;;  %v638_v13 = vld [vmem:[%s281_s7] sm:$0xff] }
  0x13   : > { %786 = vmatprep.subr.msk.mxu1 %vm308_vm0, %v397_v4  ;;  %781 = vmatpush1.msk.msra.mxu0 %vm308_vm0, %v779_v1  ;;  %v640_v18 = vcombine.high %v638_v13, %v638_v13 }
  0x14   : > { %787 = vmatpush1.msk.msra.mxu1 %vm308_vm0, %v785_v3  ;;  %782 = vmatmul.mubr.msk.f32.vlgmr.msra.gmra.mxu0 %vm304_vm1, %v293_v5 }
  0x15   : > { %788 = vmatmul.mubr.msk.f32.vlgmr.msra.gmra.mxu1 %vm304_vm1, %v783_v6  ;;  %551 = vmatprep.mubr.f32.mxu0 %v852_v0 }
  0x16   : > { %631 = vmatprep.mubr.f32.mxu1 %v852_v0 }
  0xd4   : > { %v379_v7 = vpop.f32.mrf.mxu0 }
  0xd5   : > { %v471_v8 = vpop.f32.mrf.mxu1 }
  0xd6   : > { %v381_v9 = vpop.f32.mrf.mxu0 }
  0xd7   : > { %v473_v11 = vpop.f32.mrf.mxu1  ;;  %793 = vmatprep.subr.msk.mxu1 %vm308_vm0, %v381_v9 }
  0xd8   : > { %790 = vmatprep.subr.msk.mxu0 %vm308_vm0, %v473_v11  ;;  %794 = vmatpush1.msk.msra.mxu1 %vm308_vm0, %v379_v7 }
  0xd9   : > { %791 = vmatpush1.msk.msra.mxu0 %vm308_vm0, %v471_v8  ;;  %795 = vmatmul.mubr.msk.f32.vlgmr.msra.gmra.mxu1 %vm304_vm1, %v384_v10 }
  0xda   : > { %792 = vmatmul.mubr.msk.f32.vlgmr.msra.gmra.mxu0 %vm304_vm1, %v789_v12 }
 0x199   : > { %v633_v14 = vpop.f32.mrf.mxu1 }
 0x19a   : > { %v553_v15 = vpop.f32.mrf.mxu0 }
 0x19b   : > { %v634_v16 = vadd.f32 %v633_v14, %v553_v15  ;;  %v635_v17 = vpop.f32.mrf.mxu1 }
 0x19c   : > { %v555_v19 = vpop.f32.mrf.mxu0 }
 0x19d   : > { %v636_v20 = vadd.f32 %v635_v17, %v555_v19  ;;  %v642_v21 = vadd.f32 %v638_v13, %v634_v16 }
 0x19f   : > { %v643_v22 = vadd.f32 %v640_v18, %v636_v20 }
 0x1a1   : > { %v646_v23 = vcombine.low %v642_v21, %v643_v22 }
 0x1a3   : > { %648 = vst [vmem:[%s291_s10] sm:$0xff] %v646_v23 }
 0x1a4 PF: > { %s14_s17 = sadd.s32 1, %s850_s17   ;;  %s945_s15 = smov %s846_s16 }
 0x1a5   : > { %p11_p5 = scmp.ge.s32.totalorder %s14_s17, 4   ;;  %s946_s16 = smov %s948_s18 }
 0x1a7   :  { %13 = sbr.rel (!%p11_p5) target bundleno = 2 (0x2), region = 75 }

// kernel: fica_forward.25
= control target key start
LH: loop header
LB: loop body
LE: loop exit
PB: predicated region body
PF: predicated region fallthrough
CT: control target
= control target key end

     0   :  { %s569_s15 = smov 0   ;;  %s571_s16 = smov 0   ;;  %s611_s0 = inlined_call_operand.vmem [shape: f32[2,8,256], index: 0, kind: input, shape index: {}]   ;;  %s612_s1 = inlined_call_operand.vmem [shape: f32[4,8], index: 1, kind: input, shape index: {}]   ;;  %s613_s2 = inlined_call_operand.vmem [shape: f32[4,1], index: 2, kind: input, shape index: {}]   ;;  %s614_s3 = inlined_call_operand.vmem [shape: f32[2,4,256], index: 3, kind: input, shape index: {}]   ;;  %s615_s4 = inlined_call_operand.vmem [shape: f32[2,4,256], index: 4, kind: output, shape index: {}]  }
   0x1   :  { %s573_s17 = smov 0  }
   0x2 LB: > { %s26_s18 = sadd.s32 1, %s536_s16  ;;  %p477_p0 = scmp.ge.s32.totalorder %s540_s17, 1  ;;  %s540_s17 = sphi %s573_s17, %s14_s17   ;;  %s536_s16 = sphi %s571_s16, %s617_s16   ;;  %s532_s15 = sphi %s569_s15, %s616_s15  }
   0x3   : > { %p28_p1 = scmp.ge.s32.totalorder %s26_s18, 2  ;;  %p200_p2 = scmp.lt.s32.totalorder %s540_s17, 3 }
   0x5   : > { %s619_s18 = smov (%p28_p1, %s26_s18), 0  ;;  %p201_p3 = pnand %p477_p0, %p200_p2 }
   0x6   : > { %p244_p4 = scmp.lt.s32.totalorder (!%p201_p3), %s532_s15, 1 }
   0x7   : > { %204 = sbr.rel (%p201_p3) target bundleno = 220 (0xdc), region = 36 }
   0xc   : > { %v542_v0 = vmov 0.0   ;;  %v543_v1 = vmov 0   ;;  %v276_v2 = vld [vmem:[%s613_s2] sm:$0xf]  ;;  %s621_s15 = smov (!%p244_p4, %s532_s15), 1  ;;  %vm282_vm0 = vcmask 64512  }
   0xd   : > { %350 = vmatprep.mubr.f32.mxu0 %v542_v0  ;;  %516 = vset.pattern.permute.xlu0 %v543_v1  ;;  %s487_s21 = sshll.u32 %s621_s15, 4  ;;  %v275_v5 = vld [vmem:[%s612_s1] sm:$0xf]  ;;  %s488_s27 = sshll.u32 %s621_s15, 3 }
   0xe   : > { %279 = vperm.xlu0 %516, %v276_v2   ;;  %s251_s24 = scalar_lea.vmem %s611_s0, %s487_s21  ;;  %s261_s30 = scalar_lea.vmem %s614_s3, %s488_s27 }
   0xf   : > { %v274_v3 = vld [vmem:[%s251_s24 + $0x8] sm:$0xff]  ;;  %v273_v4 = vld [vmem:[%s251_s24] sm:$0xff]  ;;  %s271_s7 = scalar_lea.vmem %s615_s4, %s488_s27 }
  0x10   : > { %316 = vmatprep.subr.mxu0 %v274_v3  ;;  %v357_v7 = vld [vmem:[%s261_s30] sm:$0xff] }
  0x11   : > { %317 = vmatpush1.msra.mxu0 %v273_v4  ;;  %v359_v10 = vcombine.high %v357_v7, %v357_v7 }
  0x12   : > { %484 = vmatmul.mubr.msk.f32.vlgmr.msra.gmra.mxu0 %vm282_vm0, %v275_v5 }
  0x89   : > { %v280_v6 = vpop.permute.xlu0 %279 }
  0xd2   : > { %v352_v8 = vpop.f32.mrf.mxu0 }
  0xd3   : > { %v353_v9 = vadd.f32 %v352_v8, %v280_v6 }
  0xd4   : > { %v354_v11 = vpop.f32.mrf.mxu0 }
  0xd5   : > { %v355_v12 = vadd.f32 %v354_v11, %v280_v6  ;;  %v361_v13 = vadd.f32 %v357_v7, %v353_v9 }
  0xd7   : > { %v362_v14 = vadd.f32 %v359_v10, %v355_v12 }
  0xd9   : > { %v365_v15 = vcombine.low %v361_v13, %v362_v14 }
  0xdb   : > { %367 = vst [vmem:[%s271_s7] sm:$0xff] %v365_v15 }
  0xdc PF: > { %s14_s17 = sadd.s32 1, %s540_s17   ;;  %s616_s15 = smov %s536_s16 }
  0xdd   : > { %p11_p5 = scmp.ge.s32.totalorder %s14_s17, 4   ;;  %s617_s16 = smov %s619_s18 }
  0xdf   :  { %13 = sbr.rel (!%p11_p5) target bundleno = 2 (0x2), region = 69 }

// kernel: fica_forward.21
= control target key start
LH: loop header
LB: loop body
LE: loop exit
PB: predicated region body
PF: predicated region fallthrough
CT: control target
= control target key end

     0   :  { %s749_s12 = smov 0   ;;  %s751_s13 = smov 0   ;;  %s829_s0 = inlined_call_operand.vmem [shape: f32[2,2,2,256], index: 0, kind: input, shape index: {}]   ;;  %s830_s1 = inlined_call_operand.vmem [shape: f32[2,2,2,256], index: 1, kind: input, shape index: {}]   ;;  %s831_s2 = inlined_call_operand.vmem [shape: f32[2,1,1], index: 2, kind: input, shape index: {}]   ;;  %s832_s3 = inlined_call_operand.vmem [shape: f32[2,2,2,2], index: 3, kind: output, shape index: {}]  }
   0x1   :  { %s753_s14 = smov 0   ;;  %s755_s15 = smov 0  }
   0x2   :  { %s757_s16 = smov 0  }
   0x3 LB: > { %s28_s17 = sadd.s32 1, %s716_s14  ;;  %s32_s18 = sadd.s32 1, %s720_s15  ;;  %s724_s16 = sphi %s757_s16, %s13_s16   ;;  %s720_s15 = sphi %s755_s15, %s836_s15   ;;  %s716_s14 = sphi %s753_s14, %s835_s14   ;;  %s712_s13 = sphi %s751_s13, %s834_s13   ;;  %s708_s12 = sphi %s749_s12, %s833_s12  }
   0x4   : > { %p30_p0 = scmp.ge.s32.totalorder %s28_s17, 2  ;;  %p621_p1 = scmp.ge.s32.totalorder %s724_s16, 1 }
   0x5   : > { %p202_p2 = scmp.lt.s32.totalorder %s724_s16, 5 }
   0x6   : > { %s838_s17 = smov (%p30_p0, %s28_s17), 0  ;;  %s840_s18 = smov (!%p30_p0, %s32_s18), %s720_s15 }
   0x7   : > { %p203_p3 = pnand %p621_p1, %p202_p2  ;;  %p34_p4 = scmp.ge.s32.totalorder %s840_s18, 2 }
   0x8   : > { %p254_p5 = scmp.lt.s32.totalorder (!%p203_p3), %s712_s13, 1  ;;  %p256_p6 = scmp.lt.s32.totalorder (!%p203_p3), %s708_s12, 1 }
   0x9   : > { %s842_s18 = smov (%p34_p4, %s840_s18), 0  ;;  %206 = sbr.rel (%p203_p3) target bundleno = 641 (0x281), region = 32 }
   0xe   : > { %v308_v0 = vlaneseq  ;;  %v726_v1 = vmov 1983009808   ;;  %vm298_vm0 = vcmask 1024   ;;  %s844_s13 = smov (!%p254_p5, %s712_s13), 1  ;;  %v727_v3 = vmov 0.0   ;;  %s846_s12 = smov (!%p256_p6, %s708_s12), 1 }
   0xf   : > { %v306_v2 = vunpack.c.l.s4 %v726_v1  ;;  %299 = vst.msk [vmem:[#allocation3] sm:$0x3] %vm298_vm0, %v727_v3  ;;  %300 = vst.msk [vmem:[#allocation4] sm:$0x3] %vm298_vm0, %v727_v3  ;;  %s623_s19 = sshll.u32 %s844_s13, 2  ;;  %s628_s20 = sshll.u32 %s844_s13, 1 }
  0x10   : > { %v784_v5 = vshrl.u32 %v308_v0, 7  ;;  %s622_s21 = sshll.u32 %s846_s12, 1  ;;  %s788_s22 = sadd.s32 %s628_s20, %s846_s12  ;;  %vm412_vm1 = vcmask 1041408   ;;  %v728_v25 = vmov 0   ;;  %vm296_vm2 = vcmask 9216  }
  0x11   : > { %v307_v4 = vunpack.c.0.s8 %v306_v2  ;;  %s263_s23 = sadd.s32 %s623_s19, %s622_s21  ;;  %676 = vset.pattern.permute.xlu1 %v728_v25  ;;  %677 = vset.pattern.permute.xlu0 %v728_v25  ;;  %297 = vst.msk [vmem:[#allocation2] sm:$0x3] %vm296_vm2, %v727_v3  ;;  %s283_s6 = scalar_lea.vmem %s831_s2, %s846_s12  ;;  %v470_v44 = vand.u32 127, %v308_v0 }
  0x12   : > { %s624_s24 = sshll.u32 %s263_s23, 1  ;;  %v630_v36 = vld [vmem:[%s283_s6] ss:$0 sm:$0xff]  ;;  %s629_s7 = sshll.u32 %s788_s22, 1 }
  0x13   : > { %s265_s27 = scalar_lea.vmem %s829_s0, %s624_s24  ;;  %v310_v6 = vsub.s32 %v307_v4, %v784_v5  ;;  %s279_s30 = scalar_lea.vmem %s830_s1, %s624_s24  ;;  %v473_v46 = vsub.s32 %v470_v44, %v784_v5 }
  0x14   : > { %v301_v7 = vld [vmem:[%s265_s27] sm:$0xf]  ;;  %s291_s10 = scalar_lea.vmem %s832_s3, %s629_s7 }
  0x15   : > { %v302_v8 = vld [vmem:[%s279_s30] sm:$0xf]  ;;  %v400_v9 = vmul.f32 %v301_v7, %v301_v7  ;;  %v311_v12 = vrot.slane %v301_v7, %v310_v6 }
  0x16   : > { %v422_v10 = vmul.f32 %v302_v8, %v302_v8  ;;  %v322_v11 = vrot.slane %v302_v8, %v310_v6  ;;  %v399_v26 = vld [vmem:[#allocation3] sm:$0x3]  ;;  %v421_v29 = vld [vmem:[#allocation4] sm:$0x3] }
  0x17   : > { %v408_v13 = vrot.slane %v400_v9, %v310_v6  ;;  %v312_v16 = vcombine.high %v311_v12, %v311_v12 }
  0x18   : > { %v430_v14 = vrot.slane %v422_v10, %v310_v6  ;;  %v323_v15 = vcombine.high %v322_v11, %v322_v11  ;;  %v303_v40 = vld [vmem:[#allocation2] sm:$0x3] }
  0x19   : > { %v409_v17 = vcombine.high %v408_v13, %v408_v13  ;;  %v413_v18 = vsel %vm412_vm1, %v408_v13, 0.0  ;;  %390 = vmatprep.mubr.f32.mxu0 %v312_v16 }
  0x1a   : > { %v431_v19 = vcombine.high %v430_v14, %v430_v14  ;;  %356 = vmatprep.subr.mxu0 %v323_v15  ;;  %v434_v21 = vsel %vm412_vm1, %v430_v14, 0.0 }
  0x1b   : > { %357 = vmatpush1.xpose.msra.mxu0 %v322_v11  ;;  %v414_v20 = vsel %vm412_vm1, %v409_v17, 0.0 }
  0x1c   : > { %v435_v22 = vsel %vm412_vm1, %v431_v19, 0.0  ;;  %v415_v23 = vadd.f32 %v414_v20, %v413_v18 }
  0x1d   : > { %v436_v24 = vadd.f32 %v435_v22, %v434_v21 }
  0x1e   : > { %391 = vmatmul.mubr.f32.vlgmr.msra.gmra.mxu0 %v311_v12  ;;  %416 = vadd.xlane.f32.xlu0 %v415_v23 }
  0x22   : > { %437 = vadd.xlane.f32.xlu0 %v436_v24 }
  0xa7   : > { %v417_v27 = vpop.xlane.xlu0 %416 }
  0xa8   : > { %v418_v28 = vadd.f32 %v417_v27, %v399_v26 }
  0xaa   : > { %420 = vst.msk [vmem:[#allocation3] sm:$0x3] %vm298_vm0, %v418_v28 }
  0xab   : > { %v438_v30 = vpop.xlane.xlu0 %437 }
  0xac   : > { %v439_v31 = vadd.f32 %v438_v30, %v421_v29 }
  0xae   : > { %440 = vst.msk [vmem:[#allocation4] sm:$0x3] %vm298_vm0, %v439_v31 }
  0xb1   : > { %v445_v32 = vld [vmem:[#allocation3] sm:$0x3] }
  0xb2   : > { %v446_v33 = vmax.f32 %v445_v32, 1e-24 }
  0xb4   : > { %678 = vrsqrt.f32 %v446_v33 }
  0xb5   : > { %v448_v34 = vld [vmem:[#allocation4] sm:$0x3] }
  0xb6   : > { %v449_v35 = vmax.f32 %v448_v34, 1e-24 }
  0xb8   : > { %680 = vrsqrt.f32 %v449_v35 }
  0xc1   : > { %v679_v37 = vpop.eup %678 }
  0xc2   : > { %v458_v38 = vmul.f32 %v679_v37, %v630_v36 }
  0xc4   : > { %461 = vperm.xlu1 %676, %v458_v38  }
  0xc5   : > { %v681_v39 = vpop.eup %680 }
  0xc8   : > { %467 = vperm.xlu1 %676, %v681_v39  }
  0xde   : > { %v392_v41 = vpop.f32.mrf.mxu0 }
  0xdf   : > { %v396_v42 = vadd.f32 %v392_v41, %v303_v40 }
  0xe0   : > { %v394_v43 = vpop.f32.mrf.mxu0 }
  0xe1   : > { %398 = vst.msk [vmem:[#allocation2] sm:$0x3] %vm296_vm2, %v396_v42 }
  0xe8   : > { %v451_v47 = vld [vmem:[#allocation2] sm:$0x3] }
 0x13f   : > { %v462_v45 = vpop.permute.xlu1 %461 }
 0x140   : > { %v464_v49 = vmul.f32 %v462_v45, %v451_v47 }
 0x143   : > { %v468_v48 = vpop.permute.xlu1 %467 }
 0x144   : > { %v474_v50 = vrot.slane %v468_v48, %v473_v46 }
 0x146   : > { %v476_v51 = vmul.f32 %v474_v50, %v464_v49 }
 0x148   : > { %v477_v52 = vsel %vm296_vm2, %v476_v51, -inf }
 0x149   : > { %478 = vmax.xlane.f32.xlu0 %v477_v52 }
 0x1d2   : > { %v479_v53 = vpop.xlane.xlu0 %478 }
 0x1d3   : > { %v480_v54 = vsub.f32 %v476_v51, %v479_v53 }
 0x1d5   : > { %v481_v55 = vmul.f32 1.442695, %v480_v54 }
 0x1d7   : > { %682 = vpow2.f32 %v481_v55 }
 0x1e4   : > { %v683_v56 = vpop.eup %682 }
 0x1e5   : > { %v483_v57 = vsel %vm296_vm2, %v683_v56, 0.0 }
 0x1e6   : > { %484 = vadd.xlane.f32.xlu1 %v483_v57 }
 0x26f   : > { %v485_v58 = vpop.xlane.xlu1 %484 }
 0x270   : > { %684 = vrcp.f32 %v485_v58 }
 0x27d   : > { %v685_v59 = vpop.eup %684 }
 0x27e   : > { %v487_v60 = vmul.f32 %v685_v59, %v683_v56 }
 0x280   : > { %488 = vst.msk [vmem:[%s291_s10] sm:$0x3] %vm296_vm2, %v487_v60 }
 0x281 PF: > { %s13_s16 = sadd.s32 1, %s724_s16   ;;  %s833_s12 = smov %s716_s14 }
 0x282   : > { %p10_p7 = scmp.ge.s32.totalorder %s13_s16, 6   ;;  %s834_s13 = smov %s720_s15 }
 0x283   : > { %s835_s14 = smov %s838_s17  ;;  %s836_s15 = smov %s842_s18 }
 0x284   :  { %12 = sbr.rel (!%p10_p7) target bundleno = 3 (0x3), region = 76 }

// kernel: fica_forward.24
= control target key start
LH: loop header
LB: loop body
LE: loop exit
PB: predicated region body
PF: predicated region fallthrough
CT: control target
= control target key end

     0   :  { %s541_s12 = smov 0   ;;  %s543_s13 = smov 0   ;;  %s584_s0 = inlined_call_operand.vmem [shape: f32[2,4,256], index: 0, kind: input, shape index: {}]   ;;  %s585_s1 = inlined_call_operand.vmem [shape: f32[8,4], index: 1, kind: input, shape index: {}]   ;;  %s586_s2 = inlined_call_operand.vmem [shape: f32[8,1], index: 2, kind: input, shape index: {}]   ;;  %s587_s3 = inlined_call_operand.vmem [shape: f32[2,8,256], index: 3, kind: output, shape index: {}]  }
   0x1   :  { %s545_s14 = smov 0  }
   0x2 LB: > { %s25_s15 = sadd.s32 1, %s513_s13  ;;  %p447_p0 = scmp.ge.s32.totalorder %s517_s14, 1  ;;  %s517_s14 = sphi %s545_s14, %s13_s14   ;;  %s513_s13 = sphi %s543_s13, %s589_s13   ;;  %s509_s12 = sphi %s541_s12, %s588_s12  }
   0x3   : > { %p27_p1 = scmp.ge.s32.totalorder %s25_s15, 2  ;;  %p158_p2 = scmp.lt.s32.totalorder %s517_s14, 3 }
   0x5   : > { %s591_s15 = smov (%p27_p1, %s25_s15), 0  ;;  %p159_p3 = pnand %p447_p0, %p158_p2 }
   0x6   : > { %p191_p4 = scmp.lt.s32.totalorder (!%p159_p3), %s509_s12, 1 }
   0x7   : > { %162 = sbr.rel (%p159_p3) target bundleno = 269 (0x10d), region = 32 }
   0xc   : > { %v519_v0 = vmov 0.0   ;;  %v520_v1 = vmov 0   ;;  %v212_v2 = vld [vmem:[%s586_s2] sm:$0xff]  ;;  %s593_s12 = smov (!%p191_p4, %s509_s12), 1  ;;  %vm224_vm0 = vcmask 1043456   ;;  %vm220_vm1 = vcmask 31744  }
   0xd   : > { %293 = vmatprep.mubr.f32.mxu0 %v519_v0  ;;  %485 = vset.pattern.permute.xlu0 %v520_v1  ;;  %s457_s18 = sshll.u32 %s593_s12, 3  ;;  %v211_v5 = vld [vmem:[%s585_s1] sm:$0xff]  ;;  %s458_s24 = sshll.u32 %s593_s12, 4 }
   0xe   : > { %215 = vperm.xlu0 %485, %v212_v2   ;;  %s198_s21 = scalar_lea.vmem %s584_s0, %s457_s18  ;;  %s208_s27 = scalar_lea.vmem %s587_s3, %s458_s24 }
   0xf   : > { %v210_v3 = vld [vmem:[%s198_s21] sm:$0xff] }
  0x10   : > { %v219_v4 = vcombine.high %v210_v3, %v210_v3 }
  0x12   : > { %452 = vmatprep.subr.msk.mxu0 %vm224_vm0, %v219_v4 }
  0x13   : > { %453 = vmatpush1.msk.msra.mxu0 %vm224_vm0, %v210_v3 }
  0x14   : > { %454 = vmatmul.mubr.msk.f32.vlgmr.msra.gmra.mxu0 %vm220_vm1, %v211_v5 }
  0x89   : > { %v216_v6 = vpop.permute.xlu0 %215 }
  0xd4   : > { %v295_v7 = vpop.f32.mrf.mxu0 }
  0xd5   : > { %v296_v8 = vadd.f32 %v295_v7, %v216_v6 }
  0xd6   : > { %v297_v9 = vpop.f32.mrf.mxu0 }
  0xd7   : > { %v302_v10 = vmul.f32 0.70710677, %v296_v8  ;;  %v298_v11 = vadd.f32 %v297_v9, %v216_v6  ;;  %v300_v53 = vmul.f32 0.5, %v296_v8 }
  0xd9   : > { %v304_v12 = vand.u32 2147483647, %v302_v10  ;;  %v303_v13 = vmul.f32 0.70710677, %v298_v11  ;;  %vm344_vm2 = vcmp.lt.f32.partialorder %v302_v10, 0.0  ;;  %v301_v58 = vmul.f32 0.5, %v298_v11 }
  0xdb   : > { %v306_v14 = vmul.f32 0.3275911, %v304_v12  ;;  %v305_v15 = vand.u32 2147483647, %v303_v13  ;;  %v332_v19 = vsub.f32 0.0, %v304_v12  ;;  %vm345_vm3 = vcmp.lt.f32.partialorder %v303_v13, 0.0 }
  0xdd   : > { %v308_v16 = vadd.f32 1.0, %v306_v14  ;;  %v307_v17 = vmul.f32 0.3275911, %v305_v15  ;;  %v333_v20 = vsub.f32 0.0, %v305_v15  ;;  %v334_v21 = vmul.f32 %v332_v19, %v304_v12 }
  0xdf   : > { %487 = vrcp.f32 %v308_v16  ;;  %v309_v18 = vadd.f32 1.0, %v307_v17  ;;  %v335_v23 = vmul.f32 %v333_v20, %v305_v15  ;;  %v336_v25 = vmul.f32 1.442695, %v334_v21 }
  0xe1   : > { %489 = vrcp.f32 %v309_v18  ;;  %v338_v29 = vmul.f32 1.442695, %v335_v23 }
  0xe2   : > { %491 = vpow2.f32 %v336_v25 }
  0xe3   : > { %493 = vpow2.f32 %v338_v29 }
  0xec   : > { %v488_v22 = vpop.eup %487 }
  0xed   : > { %v314_v24 = vmul.f32 1.0614054, %v488_v22 }
  0xee   : > { %v490_v26 = vpop.eup %489 }
  0xef   : > { %v316_v27 = vadd.f32 -1.4531521, %v314_v24  ;;  %v315_v28 = vmul.f32 1.0614054, %v490_v26  ;;  %v492_v43 = vpop.eup %491 }
  0xf0   : > { %v494_v47 = vpop.eup %493 }
  0xf1   : > { %v318_v30 = vmul.f32 %v488_v22, %v316_v27  ;;  %v317_v31 = vadd.f32 -1.4531521, %v315_v28 }
  0xf3   : > { %v320_v32 = vadd.f32 1.4214138, %v318_v30  ;;  %v319_v33 = vmul.f32 %v490_v26, %v317_v31 }
  0xf5   : > { %v322_v34 = vmul.f32 %v488_v22, %v320_v32  ;;  %v321_v35 = vadd.f32 1.4214138, %v319_v33 }
  0xf7   : > { %v324_v36 = vadd.f32 -0.28449672, %v322_v34  ;;  %v323_v37 = vmul.f32 %v490_v26, %v321_v35 }
  0xf9   : > { %v326_v38 = vmul.f32 %v488_v22, %v324_v36  ;;  %v325_v39 = vadd.f32 -0.28449672, %v323_v37 }
  0xfb   : > { %v328_v40 = vadd.f32 0.2548296, %v326_v38  ;;  %v327_v41 = vmul.f32 %v490_v26, %v325_v39 }
  0xfd   : > { %v330_v42 = vmul.f32 %v488_v22, %v328_v40  ;;  %v329_v44 = vadd.f32 0.2548296, %v327_v41 }
  0xff   : > { %v340_v45 = vmul.f32 %v492_v43, %v330_v42  ;;  %v331_v46 = vmul.f32 %v490_v26, %v329_v44 }
 0x101   : > { %v342_v48 = vsub.f32 1.0, %v340_v45  ;;  %v341_v49 = vmul.f32 %v494_v47, %v331_v46 }
 0x103   : > { %v346_v50 = vsub.f32 0.0, %v342_v48  ;;  %v343_v51 = vsub.f32 1.0, %v341_v49 }
 0x105   : > { %v348_v52 = vsel %vm344_vm2, %v346_v50, %v342_v48  ;;  %v347_v55 = vsub.f32 0.0, %v343_v51 }
 0x106   : > { %v350_v54 = vadd.f32 1.0, %v348_v52 }
 0x107   : > { %v349_v57 = vsel %vm345_vm3, %v347_v55, %v343_v51 }
 0x108   : > { %v352_v56 = vmul.f32 %v350_v54, %v300_v53  ;;  %v351_v59 = vadd.f32 1.0, %v349_v57 }
 0x10a   : > { %354 = vst [vmem:[%s208_s27] sm:$0xff] %v352_v56  ;;  %v353_v60 = vmul.f32 %v351_v59, %v301_v58 }
 0x10c   : > { %355 = vst [vmem:[%s208_s27 + $0x8] sm:$0xff] %v353_v60 }
 0x10d PF: > { %s13_s14 = sadd.s32 1, %s517_s14   ;;  %s588_s12 = smov %s513_s13 }
 0x10e   : > { %p10_p5 = scmp.ge.s32.totalorder %s13_s14, 4   ;;  %s589_s13 = smov %s591_s15 }
 0x110   :  { %12 = sbr.rel (!%p10_p5) target bundleno = 2 (0x2), region = 62 }

</bundles_post_ra>
